<compile_context>
chip_gen: v6e
topology: v6e:2x2x1
jax: 0.10.0
libtpu: 0.0.40
codegen_flags: <defaults>
</compile_context>

<pallas_src>
import jax
import jax.numpy as jnp
from jax.experimental import pallas as pl

# ----------------------------- model config ---------------------------------
D_MODEL = 32
N_HEADS = 2
D_HEAD = 16
D_FF = 64
N_LAYERS = 2
VOCAB = 32
NUM_BUCKETS = 8
MAX_DISTANCE = 16
EPS = 1e-6

# Small stand-ins for the module's max_len=960 / overlap=31
MAX_LEN = 8
OVERLAP = 3

PAD_ID, EOS_ID, BOS_ID = 0, 1, 2
AA = "ACDEFGHIKLMNPQRSTVWYBXZUO"
AA2ID = {c: i + 3 for i, c in enumerate(AA)}

NEG_INF = -1e9

# TODO(synk): HF T5Tokenizer + pretrained prot_t5 weights have no in-script
# equivalent; replaced by a deterministic char tokenizer and synthetic params.


# ------------------------------- kernel --------------------------------------
def _rmsnorm(x, w):
    # T5 LayerNorm: no mean subtraction, no bias.  f32 math.
    var = jnp.mean(x * x, axis=-1, keepdims=True)
    return x * jax.lax.rsqrt(var + EPS) * w


def encoder_kernel(x_ref, bias_ref, mask_ref, ln1_ref, wqkv_ref, wo_ref,
                   ln2_ref, wi_ref, wout_ref, fln_ref, o_ref):
    B, S, D = x_ref.shape
    HD = N_HEADS * D_HEAD                      # == D for this config

    x = x_ref[...]                             # [B, S, D] f32
    bias = bias_ref[...]                       # [H, S, S] f32
    key_mask = mask_ref[...][:, None, :]       # [B, 1, S] additive (-1e9 on PAD keys)

    for l in range(N_LAYERS):                  # static unroll over the 2 layers
        # ---------------- self attention (T5: no 1/sqrt(d) scaling) ----------
        h = _rmsnorm(x, ln1_ref[l]).astype(jnp.bfloat16).reshape(B * S, D)
        # fused QKV projection: one wide MXU matmul, f32 accumulation
        qkv = jnp.dot(h, wqkv_ref[l], preferred_element_type=jnp.float32)
        qkv = qkv.reshape(B, S, 3 * HD)        # [q_h0|q_h1|k_h0|k_h1|v_h0|v_h1]

        ctx_heads = []
        for hh in range(N_HEADS):              # tiny static loop (bias is per-head)
            q = qkv[:, :, hh * D_HEAD:(hh + 1) * D_HEAD].astype(jnp.bfloat16)
            k = qkv[:, :, HD + hh * D_HEAD: HD + (hh + 1) * D_HEAD].astype(jnp.bfloat16)
            v = qkv[:, :, 2 * HD + hh * D_HEAD: 2 * HD + (hh + 1) * D_HEAD].astype(jnp.bfloat16)
            # batched over all B chunks at once
            s = jnp.einsum('bqd,bkd->bqk', q, k,
                           preferred_element_type=jnp.float32)          # [B, S, S]
            s = s + bias[hh][None] + key_mask
            m = jnp.max(s, axis=-1, keepdims=True)
            p = jnp.exp(s - m)
            p = p * pl.reciprocal(jnp.sum(p, axis=-1, keepdims=True), approx=True)
            ctx_heads.append(jnp.einsum('bqk,bkd->bqd', p.astype(jnp.bfloat16), v,
                                        preferred_element_type=jnp.float32))
        # concat heads -> single output projection (sum over heads done by the matmul)
        ctx = jnp.concatenate(ctx_heads, axis=-1).astype(jnp.bfloat16)
        ctx = ctx.reshape(B * S, HD)
        attn = jnp.dot(ctx, wo_ref[l], preferred_element_type=jnp.float32)
        x = x + attn.reshape(B, S, D)

        # ---------------- feed forward (ReLU, no bias) ------------------------
        h2 = _rmsnorm(x, ln2_ref[l]).astype(jnp.bfloat16).reshape(B * S, D)
        ff = jnp.maximum(jnp.dot(h2, wi_ref[l],
                                 preferred_element_type=jnp.float32), 0.0)
        ff = jnp.dot(ff.astype(jnp.bfloat16), wout_ref[l],
                     preferred_element_type=jnp.float32)
        x = x + ff.reshape(B, S, D)

    # ---------------- final RMSNorm -------------------------------------------
    o_ref[...] = _rmsnorm(x, fln_ref[...])


def encoder_forward(x, bias, mask_add, params):
    B, S, D = x.shape
    # Grid-less call: everything (a few KB) lives in VMEM for the whole kernel,
    # no pipelining / grid-step overhead, no HBM round-trips between layers.
    return pl.pallas_call(
        encoder_kernel,
        out_shape=jax.ShapeDtypeStruct((B, S, D), jnp.float32),
    )(x, bias, mask_add,
      params["ln1"], params["wqkv"], params["wo"],
      params["ln2"], params["wi"], params["wout"], params["final_ln"])


# ------------------------ glue: bias / params / tokenizer --------------------
def relative_position_bucket(rel_pos, num_buckets=NUM_BUCKETS,
                             max_distance=MAX_DISTANCE):
    nb = num_buckets // 2
    buckets = (rel_pos > 0).astype(jnp.int32) * nb
    rel = jnp.abs(rel_pos)
    max_exact = nb // 2
    is_small = rel < max_exact
    rel_if_large = max_exact + (
        jnp.log(jnp.maximum(rel, 1).astype(jnp.float32) / max_exact)
        / jnp.log(max_distance / max_exact) * (nb - max_exact)
    ).astype(jnp.int32)
    rel_if_large = jnp.minimum(rel_if_large, nb - 1)
    return buckets + jnp.where(is_small, rel, rel_if_large)


def compute_position_bias(S, rel_table):
    ctx = jnp.arange(S)[:, None]
    mem = jnp.arange(S)[None, :]
    buckets = relative_position_bucket(mem - ctx)               # [S, S]
    bias = rel_table[buckets]                                   # [S, S, H] (glue gather)
    return jnp.transpose(bias, (2, 0, 1)).astype(jnp.float32)   # [H, S, S]


def init_params(key):
    def nrm(k, shape, scale=0.05):
        return (scale * jax.random.normal(k, shape)).astype(jnp.float32)

    keys = jax.random.split(key, 2 + 4 * N_LAYERS)
    ki = iter(keys)
    params = {
        "embed": nrm(next(ki), (VOCAB, D_MODEL), 1.0),
        "rel_bias": nrm(next(ki), (NUM_BUCKETS, N_HEADS), 0.1),
        "final_ln": jnp.ones((1, D_MODEL), jnp.float32),
    }
    ln1, wqkv, wo, ln2, wi, wout = [], [], [], [], [], []
    for _ in range(N_LAYERS):
        ln1.append(jnp.ones((1, D_MODEL), jnp.float32))
        # fused QKV weight, heads contiguous: [q_h0|q_h1|k_h0|k_h1|v_h0|v_h1]
        wqkv.append(nrm(next(ki), (D_MODEL, 3 * N_HEADS * D_HEAD)).astype(jnp.bfloat16))
        wo.append(nrm(next(ki), (N_HEADS * D_HEAD, D_MODEL)).astype(jnp.bfloat16))
        ln2.append(jnp.ones((1, D_MODEL), jnp.float32))
        wi.append(nrm(next(ki), (D_MODEL, D_FF)).astype(jnp.bfloat16))
        wout.append(nrm(next(ki), (D_FF, D_MODEL)).astype(jnp.bfloat16))
    params.update(
        ln1=jnp.stack(ln1), wqkv=jnp.stack(wqkv), wo=jnp.stack(wo),
        ln2=jnp.stack(ln2), wi=jnp.stack(wi), wout=jnp.stack(wout))
    return params


# ------------------------------ the module -----------------------------------
class T5EncoderPallas:
    def __init__(self, params):
        self.params = params
        self.max_len = MAX_LEN
        self.overlap = OVERLAP

    def _tokenize(self, chunks):
        toks = [[BOS_ID] + [AA2ID.get(c, 3) for c in s] + [EOS_ID] for s in chunks]
        longest = max(len(t) for t in toks)        # padding='longest'
        longest = ((longest + 7) // 8) * 8         # sublane-align S (pad keys masked)
        toks = [t + [PAD_ID] * (longest - len(t)) for t in toks]
        return jnp.array(toks, dtype=jnp.int32)

    def forward(self, _seqs):
        assert len(_seqs) == 1, "Only support batch size 1"
        seq = _seqs[0]
        chunks = [seq[max(0, i - self.overlap): i + self.max_len + self.overlap]
                  for i in range(0, len(seq), self.max_len)]
        input_ids = self._tokenize(chunks)                        # [B, S]
        x = self.params["embed"][input_ids].astype(jnp.float32)   # [B, S, D] (glue gather)
        mask_add = jnp.where(input_ids == PAD_ID, NEG_INF, 0.0).astype(jnp.float32)
        S = x.shape[1]
        bias = compute_position_bias(S, self.params["rel_bias"])  # [H, S, S]

        hidden = encoder_forward(x, bias, mask_add, self.params)  # last_hidden_state

        t = []
        for i in range(len(chunks)):
            if i == 0:
                t.append(hidden[i, 1:1 + self.max_len])
            elif i == len(chunks) - 1:
                t.append(hidden[i, 1 + self.overlap:])
            else:
                t.append(hidden[i, 1 + self.overlap:1 + self.max_len + self.overlap])
        out = jnp.concatenate(t, axis=0)[:len(seq)]
        assert out.shape[0] == len(seq)
        return out


# --------------------------------- main ---------------------------------------
if __name__ == "__main__":
    key = jax.random.PRNGKey(0)
    pkey, skey = jax.random.split(key)
    params = init_params(pkey)

    # deterministic synthetic protein sequence of length 20
    L = 20
    aa20 = "ACDEFGHIKLMNPQRSTVWY"
    idx = jax.random.randint(skey, (L,), 0, 20)
    seq = "".join(aa20[int(i)] for i in idx)

    enc = T5EncoderPallas(params)
    out = enc.forward([seq])
    out = jax.block_until_ready(out)

    assert out.shape == (L, D_MODEL), out.shape
    assert bool(jnp.all(jnp.isfinite(out)))
    print("KERNEL_OK")
</pallas_src>

<mosaic_0001>
module attributes {stable_mosaic.version = 11 : i64} {
  func.func @encoder_kernel(%arg0: memref<3x16x32xf32, #tpu.memory_space<vmem>>, %arg1: memref<2x16x16xf32, #tpu.memory_space<vmem>>, %arg2: memref<3x16xf32, #tpu.memory_space<vmem>>, %arg3: memref<2x1x32xf32, #tpu.memory_space<vmem>>, %arg4: memref<2x32x96xbf16, #tpu.memory_space<vmem>>, %arg5: memref<2x32x32xbf16, #tpu.memory_space<vmem>>, %arg6: memref<2x1x32xf32, #tpu.memory_space<vmem>>, %arg7: memref<2x32x64xbf16, #tpu.memory_space<vmem>>, %arg8: memref<2x64x32xbf16, #tpu.memory_space<vmem>>, %arg9: memref<1x32xf32, #tpu.memory_space<vmem>>, %arg10: memref<3x16x32xf32, #tpu.memory_space<vmem>>) attributes {dimension_semantics = [], scalar_prefetch = 0 : i64, scratch_operands = 0 : i64, tpu.core_type = #tpu.core_type<tc>} {
    %c0 = arith.constant 0 : index
    %c0_0 = arith.constant 0 : index
    %c0_1 = arith.constant 0 : index
    %0 = vector.load %arg0[%c0, %c0_0, %c0_1] : memref<3x16x32xf32, #tpu.memory_space<vmem>>, vector<3x16x32xf32>
    %c0_2 = arith.constant 0 : index
    %c0_3 = arith.constant 0 : index
    %c0_4 = arith.constant 0 : index
    %1 = vector.load %arg1[%c0_2, %c0_3, %c0_4] : memref<2x16x16xf32, #tpu.memory_space<vmem>>, vector<2x16x16xf32>
    %c0_5 = arith.constant 0 : index
    %c0_6 = arith.constant 0 : index
    %2 = vector.load %arg2[%c0_5, %c0_6] : memref<3x16xf32, #tpu.memory_space<vmem>>, vector<3x16xf32>
    %3 = vector.shape_cast %2 : vector<3x16xf32> to vector<3x1x16xf32>
    %c0_7 = arith.constant 0 : index
    %c0_8 = arith.constant 0 : index
    %c0_9 = arith.constant 0 : index
    %4 = vector.load %arg3[%c0_7, %c0_8, %c0_9] : memref<2x1x32xf32, #tpu.memory_space<vmem>>, vector<1x1x32xf32>
    %5 = vector.shape_cast %4 : vector<1x1x32xf32> to vector<1x32xf32>
    %6 = arith.mulf %0, %0 : vector<3x16x32xf32>
    %cst = arith.constant dense<0.000000e+00> : vector<3x16xf32>
    %7 = vector.multi_reduction <add>, %6, %cst [2] : vector<3x16x32xf32> to vector<3x16xf32>
    %8 = vector.shape_cast %7 : vector<3x16xf32> to vector<3x16x1xf32>
    %cst_10 = arith.constant 3.200000e+01 : f32
    %9 = vector.broadcast %cst_10 : f32 to vector<3x16x1xf32>
    %10 = arith.divf %8, %9 : vector<3x16x1xf32>
    %cst_11 = arith.constant 9.99999997E-7 : f32
    %11 = vector.broadcast %cst_11 : f32 to vector<3x16x1xf32>
    %12 = arith.addf %10, %11 : vector<3x16x1xf32>
    %13 = math.rsqrt %12 : vector<3x16x1xf32>
    %14 = vector.broadcast %13 : vector<3x16x1xf32> to vector<3x16x32xf32>
    %15 = arith.mulf %0, %14 : vector<3x16x32xf32>
    %16 = vector.shape_cast %5 : vector<1x32xf32> to vector<1x1x32xf32>
    %17 = vector.broadcast %16 : vector<1x1x32xf32> to vector<3x16x32xf32>
    %18 = arith.mulf %15, %17 : vector<3x16x32xf32>
    %19 = arith.truncf %18 : vector<3x16x32xf32> to vector<3x16x32xbf16>
    %20 = vector.shape_cast %19 : vector<3x16x32xbf16> to vector<48x32xbf16>
    %c0_12 = arith.constant 0 : index
    %c0_13 = arith.constant 0 : index
    %c0_14 = arith.constant 0 : index
    %21 = vector.load %arg4[%c0_12, %c0_13, %c0_14] : memref<2x32x96xbf16, #tpu.memory_space<vmem>>, vector<1x32x96xbf16>
    %22 = vector.shape_cast %21 : vector<1x32x96xbf16> to vector<32x96xbf16>
    %cst_15 = arith.constant dense<0.000000e+00> : vector<48x96xf32>
    %23 = tpu.matmul %20, %22, %cst_15 {dimension_numbers = #tpu.dot_dimension_numbers<[1], [0], [0], [1], [0, 0, 1, 1], [], []>} : vector<48x32xbf16>, vector<32x96xbf16>, vector<48x96xf32> -> vector<48x96xf32>
    %24 = vector.shape_cast %23 : vector<48x96xf32> to vector<3x16x96xf32>
    %25 = vector.extract_strided_slice %24 {offsets = [0, 0, 0], sizes = [3, 16, 16], strides = [1, 1, 1]} : vector<3x16x96xf32> to vector<3x16x16xf32>
    %26 = arith.truncf %25 : vector<3x16x16xf32> to vector<3x16x16xbf16>
    %27 = vector.extract_strided_slice %24 {offsets = [0, 0, 32], sizes = [3, 16, 16], strides = [1, 1, 1]} : vector<3x16x96xf32> to vector<3x16x16xf32>
    %28 = arith.truncf %27 : vector<3x16x16xf32> to vector<3x16x16xbf16>
    %29 = vector.extract_strided_slice %24 {offsets = [0, 0, 64], sizes = [3, 16, 16], strides = [1, 1, 1]} : vector<3x16x96xf32> to vector<3x16x16xf32>
    %30 = arith.truncf %29 : vector<3x16x16xf32> to vector<3x16x16xbf16>
    "tpu.trace_start"() <{level = 10 : i32, message = "bqd,bkd->bqk"}> : () -> ()
    %cst_16 = arith.constant dense<0.000000e+00> : vector<3x16x16xf32>
    %31 = tpu.matmul %26, %28, %cst_16 {dimension_numbers = #tpu.dot_dimension_numbers<[2], [2], [1], [1], [0, 0, 0, 1, 1, 1], [0], [0]>} : vector<3x16x16xbf16>, vector<3x16x16xbf16>, vector<3x16x16xf32> -> vector<3x16x16xf32>
    "tpu.trace_stop"() : () -> ()
    %32 = vector.extract_strided_slice %1 {offsets = [0, 0, 0], sizes = [1, 16, 16], strides = [1, 1, 1]} : vector<2x16x16xf32> to vector<1x16x16xf32>
    %33 = vector.shape_cast %32 : vector<1x16x16xf32> to vector<16x16xf32>
    %34 = vector.shape_cast %33 : vector<16x16xf32> to vector<1x16x16xf32>
    %35 = vector.broadcast %34 : vector<1x16x16xf32> to vector<3x16x16xf32>
    %36 = arith.addf %31, %35 : vector<3x16x16xf32>
    %37 = vector.broadcast %3 : vector<3x1x16xf32> to vector<3x16x16xf32>
    %38 = arith.addf %36, %37 : vector<3x16x16xf32>
    %cst_17 = arith.constant dense<0xFF800000> : vector<3x16xf32>
    %39 = vector.multi_reduction <maximumf>, %38, %cst_17 [2] : vector<3x16x16xf32> to vector<3x16xf32>
    %40 = vector.shape_cast %39 : vector<3x16xf32> to vector<3x16x1xf32>
    %41 = vector.broadcast %40 : vector<3x16x1xf32> to vector<3x16x16xf32>
    %42 = arith.subf %38, %41 : vector<3x16x16xf32>
    %43 = math.exp %42 : vector<3x16x16xf32>
    %cst_18 = arith.constant dense<0.000000e+00> : vector<3x16xf32>
    %44 = vector.multi_reduction <add>, %43, %cst_18 [2] : vector<3x16x16xf32> to vector<3x16xf32>
    %45 = vector.shape_cast %44 : vector<3x16xf32> to vector<3x16x1xf32>
    %46 = tpu.reciprocal %45 {approx = true} : vector<3x16x1xf32> -> vector<3x16x1xf32>
    %47 = vector.broadcast %46 : vector<3x16x1xf32> to vector<3x16x16xf32>
    %48 = arith.mulf %43, %47 : vector<3x16x16xf32>
    %49 = arith.truncf %48 : vector<3x16x16xf32> to vector<3x16x16xbf16>
    "tpu.trace_start"() <{level = 10 : i32, message = "bqk,bkd->bqd"}> : () -> ()
    %cst_19 = arith.constant dense<0.000000e+00> : vector<3x16x16xf32>
    %50 = tpu.matmul %49, %30, %cst_19 {dimension_numbers = #tpu.dot_dimension_numbers<[2], [1], [1], [2], [0, 0, 0, 1, 1, 2], [0], [0]>} : vector<3x16x16xbf16>, vector<3x16x16xbf16>, vector<3x16x16xf32> -> vector<3x16x16xf32>
    "tpu.trace_stop"() : () -> ()
    %51 = vector.extract_strided_slice %24 {offsets = [0, 0, 16], sizes = [3, 16, 16], strides = [1, 1, 1]} : vector<3x16x96xf32> to vector<3x16x16xf32>
    %52 = arith.truncf %51 : vector<3x16x16xf32> to vector<3x16x16xbf16>
    %53 = vector.extract_strided_slice %24 {offsets = [0, 0, 48], sizes = [3, 16, 16], strides = [1, 1, 1]} : vector<3x16x96xf32> to vector<3x16x16xf32>
    %54 = arith.truncf %53 : vector<3x16x16xf32> to vector<3x16x16xbf16>
    %55 = vector.extract_strided_slice %24 {offsets = [0, 0, 80], sizes = [3, 16, 16], strides = [1, 1, 1]} : vector<3x16x96xf32> to vector<3x16x16xf32>
    %56 = arith.truncf %55 : vector<3x16x16xf32> to vector<3x16x16xbf16>
    "tpu.trace_start"() <{level = 10 : i32, message = "bqd,bkd->bqk"}> : () -> ()
    %cst_20 = arith.constant dense<0.000000e+00> : vector<3x16x16xf32>
    %57 = tpu.matmul %52, %54, %cst_20 {dimension_numbers = #tpu.dot_dimension_numbers<[2], [2], [1], [1], [0, 0, 0, 1, 1, 1], [0], [0]>} : vector<3x16x16xbf16>, vector<3x16x16xbf16>, vector<3x16x16xf32> -> vector<3x16x16xf32>
    "tpu.trace_stop"() : () -> ()
    %58 = vector.extract_strided_slice %1 {offsets = [1, 0, 0], sizes = [1, 16, 16], strides = [1, 1, 1]} : vector<2x16x16xf32> to vector<1x16x16xf32>
    %59 = vector.shape_cast %58 : vector<1x16x16xf32> to vector<16x16xf32>
    %60 = vector.shape_cast %59 : vector<16x16xf32> to vector<1x16x16xf32>
    %61 = vector.broadcast %60 : vector<1x16x16xf32> to vector<3x16x16xf32>
    %62 = arith.addf %57, %61 : vector<3x16x16xf32>
    %63 = vector.broadcast %3 : vector<3x1x16xf32> to vector<3x16x16xf32>
    %64 = arith.addf %62, %63 : vector<3x16x16xf32>
    %cst_21 = arith.constant dense<0xFF800000> : vector<3x16xf32>
    %65 = vector.multi_reduction <maximumf>, %64, %cst_21 [2] : vector<3x16x16xf32> to vector<3x16xf32>
    %66 = vector.shape_cast %65 : vector<3x16xf32> to vector<3x16x1xf32>
    %67 = vector.broadcast %66 : vector<3x16x1xf32> to vector<3x16x16xf32>
    %68 = arith.subf %64, %67 : vector<3x16x16xf32>
    %69 = math.exp %68 : vector<3x16x16xf32>
    %cst_22 = arith.constant dense<0.000000e+00> : vector<3x16xf32>
    %70 = vector.multi_reduction <add>, %69, %cst_22 [2] : vector<3x16x16xf32> to vector<3x16xf32>
    %71 = vector.shape_cast %70 : vector<3x16xf32> to vector<3x16x1xf32>
    %72 = tpu.reciprocal %71 {approx = true} : vector<3x16x1xf32> -> vector<3x16x1xf32>
    %73 = vector.broadcast %72 : vector<3x16x1xf32> to vector<3x16x16xf32>
    %74 = arith.mulf %69, %73 : vector<3x16x16xf32>
    %75 = arith.truncf %74 : vector<3x16x16xf32> to vector<3x16x16xbf16>
    "tpu.trace_start"() <{level = 10 : i32, message = "bqk,bkd->bqd"}> : () -> ()
    %cst_23 = arith.constant dense<0.000000e+00> : vector<3x16x16xf32>
    %76 = tpu.matmul %75, %56, %cst_23 {dimension_numbers = #tpu.dot_dimension_numbers<[2], [1], [1], [2], [0, 0, 0, 1, 1, 2], [0], [0]>} : vector<3x16x16xbf16>, vector<3x16x16xbf16>, vector<3x16x16xf32> -> vector<3x16x16xf32>
    "tpu.trace_stop"() : () -> ()
    %77 = tpu.concatenate %50, %76 in 2 : vector<3x16x16xf32>, vector<3x16x16xf32> -> vector<3x16x32xf32>
    %78 = arith.truncf %77 : vector<3x16x32xf32> to vector<3x16x32xbf16>
    %79 = vector.shape_cast %78 : vector<3x16x32xbf16> to vector<48x32xbf16>
    %c0_24 = arith.constant 0 : index
    %c0_25 = arith.constant 0 : index
    %c0_26 = arith.constant 0 : index
    %80 = vector.load %arg5[%c0_24, %c0_25, %c0_26] : memref<2x32x32xbf16, #tpu.memory_space<vmem>>, vector<1x32x32xbf16>
    %81 = vector.shape_cast %80 : vector<1x32x32xbf16> to vector<32x32xbf16>
    %cst_27 = arith.constant dense<0.000000e+00> : vector<48x32xf32>
    %82 = tpu.matmul %79, %81, %cst_27 {dimension_numbers = #tpu.dot_dimension_numbers<[1], [0], [0], [1], [0, 0, 1, 1], [], []>} : vector<48x32xbf16>, vector<32x32xbf16>, vector<48x32xf32> -> vector<48x32xf32>
    %83 = vector.shape_cast %82 : vector<48x32xf32> to vector<3x16x32xf32>
    %84 = arith.addf %0, %83 : vector<3x16x32xf32>
    %c0_28 = arith.constant 0 : index
    %c0_29 = arith.constant 0 : index
    %c0_30 = arith.constant 0 : index
    %85 = vector.load %arg6[%c0_28, %c0_29, %c0_30] : memref<2x1x32xf32, #tpu.memory_space<vmem>>, vector<1x1x32xf32>
    %86 = vector.shape_cast %85 : vector<1x1x32xf32> to vector<1x32xf32>
    %87 = arith.mulf %84, %84 : vector<3x16x32xf32>
    %cst_31 = arith.constant dense<0.000000e+00> : vector<3x16xf32>
    %88 = vector.multi_reduction <add>, %87, %cst_31 [2] : vector<3x16x32xf32> to vector<3x16xf32>
    %89 = vector.shape_cast %88 : vector<3x16xf32> to vector<3x16x1xf32>
    %cst_32 = arith.constant 3.200000e+01 : f32
    %90 = vector.broadcast %cst_32 : f32 to vector<3x16x1xf32>
    %91 = arith.divf %89, %90 : vector<3x16x1xf32>
    %cst_33 = arith.constant 9.99999997E-7 : f32
    %92 = vector.broadcast %cst_33 : f32 to vector<3x16x1xf32>
    %93 = arith.addf %91, %92 : vector<3x16x1xf32>
    %94 = math.rsqrt %93 : vector<3x16x1xf32>
    %95 = vector.broadcast %94 : vector<3x16x1xf32> to vector<3x16x32xf32>
    %96 = arith.mulf %84, %95 : vector<3x16x32xf32>
    %97 = vector.shape_cast %86 : vector<1x32xf32> to vector<1x1x32xf32>
    %98 = vector.broadcast %97 : vector<1x1x32xf32> to vector<3x16x32xf32>
    %99 = arith.mulf %96, %98 : vector<3x16x32xf32>
    %100 = arith.truncf %99 : vector<3x16x32xf32> to vector<3x16x32xbf16>
    %101 = vector.shape_cast %100 : vector<3x16x32xbf16> to vector<48x32xbf16>
    %c0_34 = arith.constant 0 : index
    %c0_35 = arith.constant 0 : index
    %c0_36 = arith.constant 0 : index
    %102 = vector.load %arg7[%c0_34, %c0_35, %c0_36] : memref<2x32x64xbf16, #tpu.memory_space<vmem>>, vector<1x32x64xbf16>
    %103 = vector.shape_cast %102 : vector<1x32x64xbf16> to vector<32x64xbf16>
    %cst_37 = arith.constant dense<0.000000e+00> : vector<48x64xf32>
    %104 = tpu.matmul %101, %103, %cst_37 {dimension_numbers = #tpu.dot_dimension_numbers<[1], [0], [0], [1], [0, 0, 1, 1], [], []>} : vector<48x32xbf16>, vector<32x64xbf16>, vector<48x64xf32> -> vector<48x64xf32>
    %cst_38 = arith.constant 0.000000e+00 : f32
    %105 = vector.broadcast %cst_38 : f32 to vector<48x64xf32>
    %106 = arith.maximumf %104, %105 : vector<48x64xf32>
    %107 = arith.truncf %106 : vector<48x64xf32> to vector<48x64xbf16>
    %c0_39 = arith.constant 0 : index
    %c0_40 = arith.constant 0 : index
    %c0_41 = arith.constant 0 : index
    %108 = vector.load %arg8[%c0_39, %c0_40, %c0_41] : memref<2x64x32xbf16, #tpu.memory_space<vmem>>, vector<1x64x32xbf16>
    %109 = vector.shape_cast %108 : vector<1x64x32xbf16> to vector<64x32xbf16>
    %cst_42 = arith.constant dense<0.000000e+00> : vector<48x32xf32>
    %110 = tpu.matmul %107, %109, %cst_42 {dimension_numbers = #tpu.dot_dimension_numbers<[1], [0], [0], [1], [0, 0, 1, 1], [], []>} : vector<48x64xbf16>, vector<64x32xbf16>, vector<48x32xf32> -> vector<48x32xf32>
    %111 = vector.shape_cast %110 : vector<48x32xf32> to vector<3x16x32xf32>
    %112 = arith.addf %84, %111 : vector<3x16x32xf32>
    %c1 = arith.constant 1 : index
    %c0_43 = arith.constant 0 : index
    %c0_44 = arith.constant 0 : index
    %113 = vector.load %arg3[%c1, %c0_43, %c0_44] : memref<2x1x32xf32, #tpu.memory_space<vmem>>, vector<1x1x32xf32>
    %114 = vector.shape_cast %113 : vector<1x1x32xf32> to vector<1x32xf32>
    %115 = arith.mulf %112, %112 : vector<3x16x32xf32>
    %cst_45 = arith.constant dense<0.000000e+00> : vector<3x16xf32>
    %116 = vector.multi_reduction <add>, %115, %cst_45 [2] : vector<3x16x32xf32> to vector<3x16xf32>
    %117 = vector.shape_cast %116 : vector<3x16xf32> to vector<3x16x1xf32>
    %cst_46 = arith.constant 3.200000e+01 : f32
    %118 = vector.broadcast %cst_46 : f32 to vector<3x16x1xf32>
    %119 = arith.divf %117, %118 : vector<3x16x1xf32>
    %cst_47 = arith.constant 9.99999997E-7 : f32
    %120 = vector.broadcast %cst_47 : f32 to vector<3x16x1xf32>
    %121 = arith.addf %119, %120 : vector<3x16x1xf32>
    %122 = math.rsqrt %121 : vector<3x16x1xf32>
    %123 = vector.broadcast %122 : vector<3x16x1xf32> to vector<3x16x32xf32>
    %124 = arith.mulf %112, %123 : vector<3x16x32xf32>
    %125 = vector.shape_cast %114 : vector<1x32xf32> to vector<1x1x32xf32>
    %126 = vector.broadcast %125 : vector<1x1x32xf32> to vector<3x16x32xf32>
    %127 = arith.mulf %124, %126 : vector<3x16x32xf32>
    %128 = arith.truncf %127 : vector<3x16x32xf32> to vector<3x16x32xbf16>
    %129 = vector.shape_cast %128 : vector<3x16x32xbf16> to vector<48x32xbf16>
    %c1_48 = arith.constant 1 : index
    %c0_49 = arith.constant 0 : index
    %c0_50 = arith.constant 0 : index
    %130 = vector.load %arg4[%c1_48, %c0_49, %c0_50] : memref<2x32x96xbf16, #tpu.memory_space<vmem>>, vector<1x32x96xbf16>
    %131 = vector.shape_cast %130 : vector<1x32x96xbf16> to vector<32x96xbf16>
    %cst_51 = arith.constant dense<0.000000e+00> : vector<48x96xf32>
    %132 = tpu.matmul %129, %131, %cst_51 {dimension_numbers = #tpu.dot_dimension_numbers<[1], [0], [0], [1], [0, 0, 1, 1], [], []>} : vector<48x32xbf16>, vector<32x96xbf16>, vector<48x96xf32> -> vector<48x96xf32>
    %133 = vector.shape_cast %132 : vector<48x96xf32> to vector<3x16x96xf32>
    %134 = vector.extract_strided_slice %133 {offsets = [0, 0, 0], sizes = [3, 16, 16], strides = [1, 1, 1]} : vector<3x16x96xf32> to vector<3x16x16xf32>
    %135 = arith.truncf %134 : vector<3x16x16xf32> to vector<3x16x16xbf16>
    %136 = vector.extract_strided_slice %133 {offsets = [0, 0, 32], sizes = [3, 16, 16], strides = [1, 1, 1]} : vector<3x16x96xf32> to vector<3x16x16xf32>
    %137 = arith.truncf %136 : vector<3x16x16xf32> to vector<3x16x16xbf16>
    %138 = vector.extract_strided_slice %133 {offsets = [0, 0, 64], sizes = [3, 16, 16], strides = [1, 1, 1]} : vector<3x16x96xf32> to vector<3x16x16xf32>
    %139 = arith.truncf %138 : vector<3x16x16xf32> to vector<3x16x16xbf16>
    "tpu.trace_start"() <{level = 10 : i32, message = "bqd,bkd->bqk"}> : () -> ()
    %cst_52 = arith.constant dense<0.000000e+00> : vector<3x16x16xf32>
    %140 = tpu.matmul %135, %137, %cst_52 {dimension_numbers = #tpu.dot_dimension_numbers<[2], [2], [1], [1], [0, 0, 0, 1, 1, 1], [0], [0]>} : vector<3x16x16xbf16>, vector<3x16x16xbf16>, vector<3x16x16xf32> -> vector<3x16x16xf32>
    "tpu.trace_stop"() : () -> ()
    %141 = vector.extract_strided_slice %1 {offsets = [0, 0, 0], sizes = [1, 16, 16], strides = [1, 1, 1]} : vector<2x16x16xf32> to vector<1x16x16xf32>
    %142 = vector.shape_cast %141 : vector<1x16x16xf32> to vector<16x16xf32>
    %143 = vector.shape_cast %142 : vector<16x16xf32> to vector<1x16x16xf32>
    %144 = vector.broadcast %143 : vector<1x16x16xf32> to vector<3x16x16xf32>
    %145 = arith.addf %140, %144 : vector<3x16x16xf32>
    %146 = vector.broadcast %3 : vector<3x1x16xf32> to vector<3x16x16xf32>
    %147 = arith.addf %145, %146 : vector<3x16x16xf32>
    %cst_53 = arith.constant dense<0xFF800000> : vector<3x16xf32>
    %148 = vector.multi_reduction <maximumf>, %147, %cst_53 [2] : vector<3x16x16xf32> to vector<3x16xf32>
    %149 = vector.shape_cast %148 : vector<3x16xf32> to vector<3x16x1xf32>
    %150 = vector.broadcast %149 : vector<3x16x1xf32> to vector<3x16x16xf32>
    %151 = arith.subf %147, %150 : vector<3x16x16xf32>
    %152 = math.exp %151 : vector<3x16x16xf32>
    %cst_54 = arith.constant dense<0.000000e+00> : vector<3x16xf32>
    %153 = vector.multi_reduction <add>, %152, %cst_54 [2] : vector<3x16x16xf32> to vector<3x16xf32>
    %154 = vector.shape_cast %153 : vector<3x16xf32> to vector<3x16x1xf32>
    %155 = tpu.reciprocal %154 {approx = true} : vector<3x16x1xf32> -> vector<3x16x1xf32>
    %156 = vector.broadcast %155 : vector<3x16x1xf32> to vector<3x16x16xf32>
    %157 = arith.mulf %152, %156 : vector<3x16x16xf32>
    %158 = arith.truncf %157 : vector<3x16x16xf32> to vector<3x16x16xbf16>
    "tpu.trace_start"() <{level = 10 : i32, message = "bqk,bkd->bqd"}> : () -> ()
    %cst_55 = arith.constant dense<0.000000e+00> : vector<3x16x16xf32>
    %159 = tpu.matmul %158, %139, %cst_55 {dimension_numbers = #tpu.dot_dimension_numbers<[2], [1], [1], [2], [0, 0, 0, 1, 1, 2], [0], [0]>} : vector<3x16x16xbf16>, vector<3x16x16xbf16>, vector<3x16x16xf32> -> vector<3x16x16xf32>
    "tpu.trace_stop"() : () -> ()
    %160 = vector.extract_strided_slice %133 {offsets = [0, 0, 16], sizes = [3, 16, 16], strides = [1, 1, 1]} : vector<3x16x96xf32> to vector<3x16x16xf32>
    %161 = arith.truncf %160 : vector<3x16x16xf32> to vector<3x16x16xbf16>
    %162 = vector.extract_strided_slice %133 {offsets = [0, 0, 48], sizes = [3, 16, 16], strides = [1, 1, 1]} : vector<3x16x96xf32> to vector<3x16x16xf32>
    %163 = arith.truncf %162 : vector<3x16x16xf32> to vector<3x16x16xbf16>
    %164 = vector.extract_strided_slice %133 {offsets = [0, 0, 80], sizes = [3, 16, 16], strides = [1, 1, 1]} : vector<3x16x96xf32> to vector<3x16x16xf32>
    %165 = arith.truncf %164 : vector<3x16x16xf32> to vector<3x16x16xbf16>
    "tpu.trace_start"() <{level = 10 : i32, message = "bqd,bkd->bqk"}> : () -> ()
    %cst_56 = arith.constant dense<0.000000e+00> : vector<3x16x16xf32>
    %166 = tpu.matmul %161, %163, %cst_56 {dimension_numbers = #tpu.dot_dimension_numbers<[2], [2], [1], [1], [0, 0, 0, 1, 1, 1], [0], [0]>} : vector<3x16x16xbf16>, vector<3x16x16xbf16>, vector<3x16x16xf32> -> vector<3x16x16xf32>
    "tpu.trace_stop"() : () -> ()
    %167 = vector.extract_strided_slice %1 {offsets = [1, 0, 0], sizes = [1, 16, 16], strides = [1, 1, 1]} : vector<2x16x16xf32> to vector<1x16x16xf32>
    %168 = vector.shape_cast %167 : vector<1x16x16xf32> to vector<16x16xf32>
    %169 = vector.shape_cast %168 : vector<16x16xf32> to vector<1x16x16xf32>
    %170 = vector.broadcast %169 : vector<1x16x16xf32> to vector<3x16x16xf32>
    %171 = arith.addf %166, %170 : vector<3x16x16xf32>
    %172 = vector.broadcast %3 : vector<3x1x16xf32> to vector<3x16x16xf32>
    %173 = arith.addf %171, %172 : vector<3x16x16xf32>
    %cst_57 = arith.constant dense<0xFF800000> : vector<3x16xf32>
    %174 = vector.multi_reduction <maximumf>, %173, %cst_57 [2] : vector<3x16x16xf32> to vector<3x16xf32>
    %175 = vector.shape_cast %174 : vector<3x16xf32> to vector<3x16x1xf32>
    %176 = vector.broadcast %175 : vector<3x16x1xf32> to vector<3x16x16xf32>
    %177 = arith.subf %173, %176 : vector<3x16x16xf32>
    %178 = math.exp %177 : vector<3x16x16xf32>
    %cst_58 = arith.constant dense<0.000000e+00> : vector<3x16xf32>
    %179 = vector.multi_reduction <add>, %178, %cst_58 [2] : vector<3x16x16xf32> to vector<3x16xf32>
    %180 = vector.shape_cast %179 : vector<3x16xf32> to vector<3x16x1xf32>
    %181 = tpu.reciprocal %180 {approx = true} : vector<3x16x1xf32> -> vector<3x16x1xf32>
    %182 = vector.broadcast %181 : vector<3x16x1xf32> to vector<3x16x16xf32>
    %183 = arith.mulf %178, %182 : vector<3x16x16xf32>
    %184 = arith.truncf %183 : vector<3x16x16xf32> to vector<3x16x16xbf16>
    "tpu.trace_start"() <{level = 10 : i32, message = "bqk,bkd->bqd"}> : () -> ()
    %cst_59 = arith.constant dense<0.000000e+00> : vector<3x16x16xf32>
    %185 = tpu.matmul %184, %165, %cst_59 {dimension_numbers = #tpu.dot_dimension_numbers<[2], [1], [1], [2], [0, 0, 0, 1, 1, 2], [0], [0]>} : vector<3x16x16xbf16>, vector<3x16x16xbf16>, vector<3x16x16xf32> -> vector<3x16x16xf32>
    "tpu.trace_stop"() : () -> ()
    %186 = tpu.concatenate %159, %185 in 2 : vector<3x16x16xf32>, vector<3x16x16xf32> -> vector<3x16x32xf32>
    %187 = arith.truncf %186 : vector<3x16x32xf32> to vector<3x16x32xbf16>
    %188 = vector.shape_cast %187 : vector<3x16x32xbf16> to vector<48x32xbf16>
    %c1_60 = arith.constant 1 : index
    %c0_61 = arith.constant 0 : index
    %c0_62 = arith.constant 0 : index
    %189 = vector.load %arg5[%c1_60, %c0_61, %c0_62] : memref<2x32x32xbf16, #tpu.memory_space<vmem>>, vector<1x32x32xbf16>
    %190 = vector.shape_cast %189 : vector<1x32x32xbf16> to vector<32x32xbf16>
    %cst_63 = arith.constant dense<0.000000e+00> : vector<48x32xf32>
    %191 = tpu.matmul %188, %190, %cst_63 {dimension_numbers = #tpu.dot_dimension_numbers<[1], [0], [0], [1], [0, 0, 1, 1], [], []>} : vector<48x32xbf16>, vector<32x32xbf16>, vector<48x32xf32> -> vector<48x32xf32>
    %192 = vector.shape_cast %191 : vector<48x32xf32> to vector<3x16x32xf32>
    %193 = arith.addf %112, %192 : vector<3x16x32xf32>
    %c1_64 = arith.constant 1 : index
    %c0_65 = arith.constant 0 : index
    %c0_66 = arith.constant 0 : index
    %194 = vector.load %arg6[%c1_64, %c0_65, %c0_66] : memref<2x1x32xf32, #tpu.memory_space<vmem>>, vector<1x1x32xf32>
    %195 = vector.shape_cast %194 : vector<1x1x32xf32> to vector<1x32xf32>
    %196 = arith.mulf %193, %193 : vector<3x16x32xf32>
    %cst_67 = arith.constant dense<0.000000e+00> : vector<3x16xf32>
    %197 = vector.multi_reduction <add>, %196, %cst_67 [2] : vector<3x16x32xf32> to vector<3x16xf32>
    %198 = vector.shape_cast %197 : vector<3x16xf32> to vector<3x16x1xf32>
    %cst_68 = arith.constant 3.200000e+01 : f32
    %199 = vector.broadcast %cst_68 : f32 to vector<3x16x1xf32>
    %200 = arith.divf %198, %199 : vector<3x16x1xf32>
    %cst_69 = arith.constant 9.99999997E-7 : f32
    %201 = vector.broadcast %cst_69 : f32 to vector<3x16x1xf32>
    %202 = arith.addf %200, %201 : vector<3x16x1xf32>
    %203 = math.rsqrt %202 : vector<3x16x1xf32>
    %204 = vector.broadcast %203 : vector<3x16x1xf32> to vector<3x16x32xf32>
    %205 = arith.mulf %193, %204 : vector<3x16x32xf32>
    %206 = vector.shape_cast %195 : vector<1x32xf32> to vector<1x1x32xf32>
    %207 = vector.broadcast %206 : vector<1x1x32xf32> to vector<3x16x32xf32>
    %208 = arith.mulf %205, %207 : vector<3x16x32xf32>
    %209 = arith.truncf %208 : vector<3x16x32xf32> to vector<3x16x32xbf16>
    %210 = vector.shape_cast %209 : vector<3x16x32xbf16> to vector<48x32xbf16>
    %c1_70 = arith.constant 1 : index
    %c0_71 = arith.constant 0 : index
    %c0_72 = arith.constant 0 : index
    %211 = vector.load %arg7[%c1_70, %c0_71, %c0_72] : memref<2x32x64xbf16, #tpu.memory_space<vmem>>, vector<1x32x64xbf16>
    %212 = vector.shape_cast %211 : vector<1x32x64xbf16> to vector<32x64xbf16>
    %cst_73 = arith.constant dense<0.000000e+00> : vector<48x64xf32>
    %213 = tpu.matmul %210, %212, %cst_73 {dimension_numbers = #tpu.dot_dimension_numbers<[1], [0], [0], [1], [0, 0, 1, 1], [], []>} : vector<48x32xbf16>, vector<32x64xbf16>, vector<48x64xf32> -> vector<48x64xf32>
    %cst_74 = arith.constant 0.000000e+00 : f32
    %214 = vector.broadcast %cst_74 : f32 to vector<48x64xf32>
    %215 = arith.maximumf %213, %214 : vector<48x64xf32>
    %216 = arith.truncf %215 : vector<48x64xf32> to vector<48x64xbf16>
    %c1_75 = arith.constant 1 : index
    %c0_76 = arith.constant 0 : index
    %c0_77 = arith.constant 0 : index
    %217 = vector.load %arg8[%c1_75, %c0_76, %c0_77] : memref<2x64x32xbf16, #tpu.memory_space<vmem>>, vector<1x64x32xbf16>
    %218 = vector.shape_cast %217 : vector<1x64x32xbf16> to vector<64x32xbf16>
    %cst_78 = arith.constant dense<0.000000e+00> : vector<48x32xf32>
    %219 = tpu.matmul %216, %218, %cst_78 {dimension_numbers = #tpu.dot_dimension_numbers<[1], [0], [0], [1], [0, 0, 1, 1], [], []>} : vector<48x64xbf16>, vector<64x32xbf16>, vector<48x32xf32> -> vector<48x32xf32>
    %220 = vector.shape_cast %219 : vector<48x32xf32> to vector<3x16x32xf32>
    %221 = arith.addf %193, %220 : vector<3x16x32xf32>
    %c0_79 = arith.constant 0 : index
    %c0_80 = arith.constant 0 : index
    %222 = vector.load %arg9[%c0_79, %c0_80] : memref<1x32xf32, #tpu.memory_space<vmem>>, vector<1x32xf32>
    %223 = arith.mulf %221, %221 : vector<3x16x32xf32>
    %cst_81 = arith.constant dense<0.000000e+00> : vector<3x16xf32>
    %224 = vector.multi_reduction <add>, %223, %cst_81 [2] : vector<3x16x32xf32> to vector<3x16xf32>
    %225 = vector.shape_cast %224 : vector<3x16xf32> to vector<3x16x1xf32>
    %cst_82 = arith.constant 3.200000e+01 : f32
    %226 = vector.broadcast %cst_82 : f32 to vector<3x16x1xf32>
    %227 = arith.divf %225, %226 : vector<3x16x1xf32>
    %cst_83 = arith.constant 9.99999997E-7 : f32
    %228 = vector.broadcast %cst_83 : f32 to vector<3x16x1xf32>
    %229 = arith.addf %227, %228 : vector<3x16x1xf32>
    %230 = math.rsqrt %229 : vector<3x16x1xf32>
    %231 = vector.broadcast %230 : vector<3x16x1xf32> to vector<3x16x32xf32>
    %232 = arith.mulf %221, %231 : vector<3x16x32xf32>
    %233 = vector.shape_cast %222 : vector<1x32xf32> to vector<1x1x32xf32>
    %234 = vector.broadcast %233 : vector<1x1x32xf32> to vector<3x16x32xf32>
    %235 = arith.mulf %232, %234 : vector<3x16x32xf32>
    %c0_84 = arith.constant 0 : index
    %c0_85 = arith.constant 0 : index
    %c0_86 = arith.constant 0 : index
    %236 = vector.load %arg10[%c0_84, %c0_85, %c0_86] : memref<3x16x32xf32, #tpu.memory_space<vmem>>, vector<3x16x32xf32>
    tpu.vector_store %arg10[%c0_84, %c0_85, %c0_86], %235 {strides = array<i32>} : memref<3x16x32xf32, #tpu.memory_space<vmem>>, vector<3x16x32xf32>,
    return
  }
}

</mosaic_0001>

<bundles_post_ra>
// kernel: tpu_custom_call.1
= control target key start
LH: loop header
LB: loop body
LE: loop exit
PB: predicated region body
PF: predicated region fallthrough
CT: control target
= control target key end

     0   :  { %15 = vsyncpa [#allocation3], 0  ;;  %s4295_s0 = inlined_call_operand.vmem [shape: f32[3,16,32], index: 0, kind: input, shape index: {}]   ;;  %s4296_s1 = inlined_call_operand.vmem [shape: f32[2,16,16], index: 1, kind: input, shape index: {}]   ;;  %s4297_s2 = inlined_call_operand.vmem [shape: f32[3,16], index: 2, kind: input, shape index: {}]   ;;  %s4298_s3 = inlined_call_operand.vmem [shape: f32[2,1,32], index: 3, kind: input, shape index: {}]   ;;  %s4299_s4 = inlined_call_operand.hbm [shape: bf16[2,32,96], index: 4, kind: input, shape index: {}]   ;;  %s4300_s5 = inlined_call_operand.hbm [shape: bf16[2,32,32], index: 5, kind: input, shape index: {}]   ;;  %s4301_s6 = inlined_call_operand.vmem [shape: f32[2,1,32], index: 6, kind: input, shape index: {}]   ;;  %s4302_s7 = inlined_call_operand.hbm [shape: bf16[2,32,64], index: 7, kind: input, shape index: {}]   ;;  %s4303_s8 = inlined_call_operand.vmem [shape: bf16[2,64,32], index: 8, kind: input, shape index: {}]   ;;  %s4304_s9 = inlined_call_operand.vmem [shape: f32[1,32], index: 9, kind: input, shape index: {}]   ;;  %s4305_s10 = inlined_call_operand.hbm [shape: f32[3,16,32], index: 10, kind: output, shape index: {}]  }
   0x1   :  { %16 = vsyncpa [#allocation6], 0 }
   0x2   :  { %17 = vsyncpa [#allocation4], 0  ;;  %s3525_s13 = smov [#allocation5]   ;;  %s3526_s15 = smov [#allocation2]  }
   0x3   :  { %s43_s14 = sshll.u32 %s3525_s13, 4  ;;  %s31_s16 = sshll.u32 %s3526_s15, 4  ;;  %s44_s14 = int_to_ptr.vmem [resolvable:$true] %s43_s14  ;;  %s32_s16 = int_to_ptr.vmem [resolvable:$true] %s31_s16 }
   0x4   :  { %s3447_s17 = scalar_lea.vmem %s44_s14, 512  ;;  %p3452_p1 = scmp.lt.s32.totalorder %s44_s14, %s44_s14 }
   0x5   :  { %p3448_p0 = scmp.ne.s32.totalorder %s44_s14, %s3447_s17  ;;  %p3453_p2 = scmp.lt.s32.totalorder %s3447_s17, %s3447_s17 }
   0x7   :  { %p3454_p3 = por %p3453_p2, %p3452_p1 }
   0x9   :  { %p3455_p4 = pnand %p3454_p3, %p3448_p0 }
   0xb   :  { %3458 = shalt.err (!%p3455_p4)
}
   0xc   :  { %s3527_s18 = smov 64   ;;  %s3528_s19 = smov 4  }
   0xd   :  { %49 = dma.hbm_to_vmem [thread:$0]  %s4300_s5, 512, %s44_s14, [#allocation6], %s3527_s18, %s3527_s18, %s3528_s19  }
   0xe   :  { %s3467_s22 = scalar_lea.vmem %s32_s16, 512  ;;  %p3472_p6 = scmp.lt.s32.totalorder %s32_s16, %s32_s16 }
   0xf   :  { %p3468_p5 = scmp.ne.s32.totalorder %s32_s16, %s3467_s22  ;;  %p3473_p7 = scmp.lt.s32.totalorder %s3467_s22, %s3467_s22 }
  0x11   :  { %p3474_p8 = por %p3473_p7, %p3472_p6 }
  0x13   :  { %p3475_p9 = pnand %p3474_p8, %p3468_p5 }
  0x15   :  { %3478 = shalt.err (!%p3475_p9)
}
  0x16   :  { %37 = dma.hbm_to_vmem [thread:$0]  %s4299_s4, 512, %s32_s16, [#allocation3], %s3527_s18, %s3527_s18, %s3528_s19  }
  0x17   :  { %s3529_s25 = smov [#allocation7]  }
  0x18   :  { %s57_s26 = sshll.u32 %s3529_s25, 4  ;;  %s58_s26 = int_to_ptr.vmem [resolvable:$true] %s57_s26 }
  0x19   :  { %s3487_s27 = scalar_lea.vmem %s58_s26, 512  ;;  %p3492_p11 = scmp.lt.s32.totalorder %s58_s26, %s58_s26 }
  0x1a   :  { %p3488_p10 = scmp.ne.s32.totalorder %s58_s26, %s3487_s27  ;;  %p3493_p12 = scmp.lt.s32.totalorder %s3487_s27, %s3487_s27 }
  0x1c   :  { %p3494_p13 = por %p3493_p12, %p3492_p11 }
  0x1e   :  { %p3495_p0 = pnand %p3494_p13, %p3488_p10 }
  0x20   :  { %3498 = shalt.err (!%p3495_p0)
}
  0x21   :  { %63 = dma.hbm_to_vmem [thread:$0]  %s4302_s7, 512, %s58_s26, [#allocation6], %s3527_s18, %s3527_s18, %s3528_s19  }
  0x22   :  { %3519 = dma.done.wait [#allocation3], 512  }
  0x23   :  { %3520 = vsyncadd [#allocation3], 4294966784 }
  0x24   :  { %3521 = dma.done.wait [#allocation6], 1024  }
  0x25   :  { %3522 = vsyncadd [#allocation6], 4294966272  ;;  %v78_v0 = vld [vmem:[%s4295_s0] sm:$0xff]  ;;  %vm120_vm0 = vcmask 261120   ;;  %v3617_v1 = vld [vmem:[%s4295_s0 + $0x10] sm:$0xff]  ;;  %v3530_v19 = vmov 0.0  }
  0x26   :  { %v3622_v2 = vld [vmem:[%s4295_s0 + $0x8] sm:$0xff]  ;;  %v114_v3 = vmul.f32 %v78_v0, %v78_v0  ;;  %v116_v4 = vmul.f32 %v3617_v1, %v3617_v1  ;;  %v3631_v6 = vld [vmem:[%s4295_s0 + $0x18] sm:$0xff]  ;;  %v3641_v8 = vld [vmem:[%s4295_s0 + $0x20] sm:$0xff]  ;;  %2927 = vmatprep.subr.bf16.mxu0 %v3530_v19  ;;  %vm3531_vm1 = vmmov 0   ;;  %2949 = vmatprep.subr.bf16.mxu1 %v3530_v19  ;;  %s3532_s22 = smov 96   ;;  %vm267_vm2 = vcmask 130048  }
  0x27   :  { %v115_v5 = vmul.f32 %v3622_v2, %v3622_v2  ;;  %v3636_v7 = vld [vmem:[%s4295_s0 + $0x28] sm:$0xff]  ;;  %v117_v9 = vmul.f32 %v3631_v6, %v3631_v6  ;;  %v118_v11 = vmul.f32 %v3641_v8, %v3641_v8  ;;  %2931 = vmatprep.mubr.msk.bf16.mxu0 %vm3531_vm1, %v3530_v19  ;;  %v3254_v20 = vld [vmem:[#allocation2] sm:$0xff]   ;;  %2951 = vmatprep.mubr.msk.bf16.mxu1 %vm3531_vm1, %v3530_v19  ;;  %s3535_s28 = smov 112   ;;  %s3536_s12 = smov 48   ;;  %vm1323_vm3 = vcmask 523264  }
  0x28   :  { %v119_v10 = vmul.f32 %v3636_v7, %v3636_v7  ;;  %v121_v12 = vsel %vm120_vm0, %v114_v3, 0.0  ;;  %v127_v13 = vsel %vm120_vm0, %v116_v4, 0.0  ;;  %v3253_v18 = vld [vmem:[#allocation2 + $0x8] sm:$0xff]   ;;  %v2752_v42 = vld [vmem:[%s4298_s3] ss:$0 sm:$0xff]  ;;  %s3537_s13 = smov 16  }
  0x29   :  { %122 = vadd.xlane.f32.xlu0 %v121_v12  ;;  %128 = vadd.xlane.f32.xlu1 %v127_v13  ;;  %v124_v14 = vsel %vm120_vm0, %v115_v5, 0.0  ;;  %v130_v15 = vsel %vm120_vm0, %v117_v9, 0.0  ;;  %v133_v17 = vsel %vm120_vm0, %v118_v11, 0.0 }
  0x2a   :  { %v136_v16 = vsel %vm120_vm0, %v119_v10, 0.0  ;;  %2928 = vmatpush3.bf16.msra.mxu0 %v3253_v18  ;;  %v3533_v18 = vmov 1966171168  }
  0x2b   :  { %2929 = vmatprep.subr.bf16.mxu0 %v3530_v19 }
  0x2d   :  { %125 = vadd.xlane.f32.xlu0 %v124_v14  ;;  %131 = vadd.xlane.f32.xlu1 %v130_v15 }
  0x2e   :  { %2930 = vmatpush3.bf16.msra.mxu0 %v3254_v20  ;;  %v99_v20 = vunpack.c.l.s4 %v3533_v18 }
  0x2f   :  { %2943 = vmatprep.subr.bf16.mxu0 %v3530_v19 }
  0x31   :  { %137 = vadd.xlane.f32.xlu1 %v136_v16  ;;  %134 = vadd.xlane.f32.xlu0 %v133_v17 }
  0xb2   :  { %v123_v21 = vpop.xlane.xlu0 %122  ;;  %v129_v22 = vpop.xlane.xlu1 %128 }
  0xb3   :  { %v140_v23 = vmul.f32 0.03125, %v123_v21  ;;  %v142_v24 = vmul.f32 0.03125, %v129_v22  ;;  %v101_v21 = vlaneseq  ;;  %v100_v22 = vunpack.c.0.s8 %v99_v20 }
  0xb5   :  { %v146_v25 = vadd.f32 1e-06, %v140_v23  ;;  %v148_v30 = vadd.f32 1e-06, %v142_v24  ;;  %v102_v23 = vshrl.u32 %v101_v21, 7 }
  0xb6   :  { %v126_v26 = vpop.xlane.xlu0 %125  ;;  %v132_v27 = vpop.xlane.xlu1 %131 }
  0xb7   :  { %3273 = vrsqrt.f32 %v146_v25  ;;  %v141_v28 = vmul.f32 0.03125, %v126_v26  ;;  %v143_v29 = vmul.f32 0.03125, %v132_v27  ;;  %v103_v24 = vsub.s32 %v100_v22, %v102_v23  ;;  %v2751_v25 = vld.sshfl [vmem:[%s4297_s2] sm:$0x13 pattern:$0x75316420] }
  0xb8   :  { %v417_v27 = vsub.s32 0, %v102_v23  ;;  %s3534_s2 = smov 80  }
  0xb9   :  { %v147_v31 = vadd.f32 1e-06, %v141_v28  ;;  %v149_v32 = vadd.f32 1e-06, %v143_v29  ;;  %v104_v26 = vrot.slane %v2751_v25, %v103_v24  ;;  %v84_v28 = vld [vmem:[%s4296_s1] sm:$0xff] }
  0xba   :  { %v138_v33 = vpop.xlane.xlu1 %137  ;;  %v135_v34 = vpop.xlane.xlu0 %134 }
  0xbb   :  { %3275 = vrsqrt.f32 %v147_v31  ;;  %v145_v35 = vmul.f32 0.03125, %v138_v33  ;;  %v144_v36 = vmul.f32 0.03125, %v135_v34  ;;  %v3716_v29 = vrot.slane %v104_v26, %v417_v27  ;;  %v85_v34 = vld [vmem:[%s4296_s1 + $0x8] sm:$0xff] }
  0xbc   :  { %3277 = vrsqrt.f32 %v148_v30  ;;  %v97_v30 = vcombine.high %v2751_v25, %v2751_v25 }
  0xbd   :  { %3279 = vrsqrt.f32 %v149_v32  ;;  %v151_v37 = vadd.f32 1e-06, %v145_v35  ;;  %v150_v38 = vadd.f32 1e-06, %v144_v36 }
  0xbe   :  { %v111_v36 = vrot.slane %v97_v30, %v103_v24 }
  0xbf   :  { %3281 = vrsqrt.f32 %v151_v37 }
  0xc0   :  { %3283 = vrsqrt.f32 %v150_v38 }
  0xc4   :  { %v3274_v39 = vpop.eup %3273 }
  0xc5   :  { %v158_v40 = vmul.f32 %v3274_v39, %v78_v0 }
  0xc7   :  { %v170_v46 = vmul.f32 %v2752_v42, %v158_v40 }
  0xc8   :  { %v3276_v41 = vpop.eup %3275 }
  0xc9   :  { %v3278_v43 = vpop.eup %3277  ;;  %v159_v44 = vmul.f32 %v3276_v41, %v3622_v2 }
  0xca   :  { %v3280_v45 = vpop.eup %3279  ;;  %v160_v49 = vmul.f32 %v3278_v43, %v3617_v1 }
  0xcb   :  { %v171_v47 = vmul.f32 %v2752_v42, %v159_v44  ;;  %v161_v50 = vmul.f32 %v3280_v45, %v3631_v6 }
  0xcc   :  { %v3282_v51 = vpop.eup %3281  ;;  %v172_v53 = vmul.f32 %v2752_v42, %v160_v49 }
  0xcd   :  { %v176_v48 = vpack.c.bf16 %v171_v47, %v170_v46  ;;  %v3284_v52 = vpop.eup %3283  ;;  %v173_v54 = vmul.f32 %v2752_v42, %v161_v50  ;;  %v163_v56 = vmul.f32 %v3282_v51, %v3636_v7 }
  0xce   :  { %v162_v55 = vmul.f32 %v3284_v52, %v3641_v8 }
  0xcf   :  { %2932 = vmatmul.mubr.msk.bf16.vlgmr.msra.gmra.mxu0 %vm120_vm0, %v176_v48  ;;  %v177_v57 = vpack.c.bf16 %v173_v54, %v172_v53  ;;  %v175_v59 = vmul.f32 %v2752_v42, %v163_v56  ;;  %v112_v48 = vcombine.high %v104_v26, %v104_v26 }
  0xd0   :  { %2935 = vmatprep.mubr.msk.bf16.mxu0 %vm3531_vm1, %v3530_v19  ;;  %v174_v58 = vmul.f32 %v2752_v42, %v162_v55  ;;  %v3724_v42 = vrot.slane %v111_v36, %v417_v27 }
  0xd1   :  { %v3730_v54 = vrot.slane %v112_v48, %v417_v27 }
  0xd2   :  { %v178_v60 = vpack.c.bf16 %v175_v59, %v174_v58 }
  0xd7   :  { %2936 = vmatmul.mubr.msk.bf16.gmra.mxu0 %vm120_vm0, %v177_v57 }
  0xd8   :  { %2939 = vmatprep.mubr.msk.bf16.mxu0 %vm3531_vm1, %v3530_v19 }
  0xdf   :  { %2940 = vmatmul.mubr.msk.bf16.gmra.mxu0 %vm120_vm0, %v178_v60 }
  0xe0   :  { %2945 = vmatprep.mubr.msk.bf16.mxu0 %vm3531_vm1, %v3530_v19 }
 0x18f   :  { %v238_v61 = vpop.f32.mrf.mxu0 }
 0x191   :  { %v2933_v62 = vpop.f32.mrf.mxu0 }
 0x193   :  { %v241_v63 = vpop.f32.mrf.mxu0 }
 0x194   :  { %v3680_v0 = vpack.c.bf16 %v241_v63, %v238_v61 }
 0x195   :  { %v2934_v1 = vpop.f32.mrf.mxu0 }
 0x196   :  { %265 = vrot.lane.b32.xlu0 %v3680_v0, %s3532_s22 }
 0x197   :  { %v246_v2 = vpop.f32.mrf.mxu0 }
 0x199   :  { %v2937_v3 = vpop.f32.mrf.mxu0 }
 0x19b   :  { %v249_v4 = vpop.f32.mrf.mxu0 }
 0x19c   :  { %v3684_v5 = vpack.c.bf16 %v249_v4, %v246_v2 }
 0x19d   :  { %v2938_v6 = vpop.f32.mrf.mxu0 }
 0x19e   :  { %316 = vrot.lane.b32.xlu1 %v3684_v5, %s3532_s22 }
 0x19f   :  { %v254_v7 = vpop.f32.mrf.mxu0 }
 0x1a1   :  { %v2941_v8 = vpop.f32.mrf.mxu0 }
 0x1a3   :  { %v257_v9 = vpop.f32.mrf.mxu0 }
 0x1a4   :  { %v3688_v10 = vpack.c.bf16 %v257_v9, %v254_v7 }
 0x1a5   :  { %v2942_v11 = vpop.f32.mrf.mxu0 }
 0x1a6   :  { %366 = vrot.lane.b32.xlu1 %v3688_v10, %s3532_s22 }
 0x208   :  { %v266_v12 = vpop.permute.xlu0 %265 }
 0x209   :  { %v272_v13 = vsel %vm267_vm2, %v266_v12, 0 }
 0x20a   :  { %2944 = vmatpush3.bf16.xpose.msra.mxu0 %v272_v13 }
 0x20b   :  { %2961 = vmatprep.subr.bf16.mxu0 %v3530_v19 }
 0x210   :  { %v317_v14 = vpop.permute.xlu1 %316 }
 0x211   :  { %2946 = vmatmul.mubr.msk.bf16.vlgmr.msra.gmra.mxu0 %vm267_vm2, %v3680_v0  ;;  %v322_v15 = vsel %vm267_vm2, %v317_v14, 0 }
 0x212   :  { %2950 = vmatpush3.bf16.xpose.msra.mxu1 %v322_v15  ;;  %2963 = vmatprep.mubr.msk.bf16.mxu0 %vm3531_vm1, %v3530_v19 }
 0x213   :  { %2955 = vmatprep.subr.bf16.mxu1 %v3530_v19 }
 0x218   :  { %v367_v16 = vpop.permute.xlu1 %366 }
 0x219   :  { %v372_v17 = vsel %vm267_vm2, %v367_v16, 0  ;;  %2952 = vmatmul.mubr.msk.bf16.vlgmr.msra.gmra.mxu1 %vm267_vm2, %v3684_v5 }
 0x21a   :  { %2956 = vmatpush3.bf16.xpose.msra.mxu1 %v372_v17  ;;  %2957 = vmatprep.mubr.msk.bf16.mxu1 %vm3531_vm1, %v3530_v19 }
 0x21b   :  { %2967 = vmatprep.subr.bf16.mxu1 %v3530_v19 }
 0x221   :  { %2958 = vmatmul.mubr.msk.bf16.vlgmr.msra.gmra.mxu1 %vm267_vm2, %v3688_v10 }
 0x222   :  { %2969 = vmatprep.mubr.msk.bf16.mxu1 %vm3531_vm1, %v3530_v19 }
 0x2d1   :  { %v308_v31 = vpop.f32.mrf.mxu0 }
 0x2d2   :  { %v309_v32 = vadd.f32 %v308_v31, %v84_v28 }
 0x2d3   :  { %v2947_v33 = vpop.f32.mrf.mxu0 }
 0x2d4   :  { %v430_v35 = vadd.f32 %v3716_v29, %v309_v32 }
 0x2d5   :  { %v311_v37 = vpop.f32.mrf.mxu0 }
 0x2d6   :  { %v312_v38 = vadd.f32 %v311_v37, %v85_v34  ;;  %v436_v39 = vsel %vm267_vm2, %v430_v35, -inf }
 0x2d7   :  { %437 = vmax.xlane.f32.xlu1 %v436_v39  ;;  %v2948_v40 = vpop.f32.mrf.mxu0 }
 0x2d8   :  { %v431_v41 = vadd.f32 %v3716_v29, %v312_v38 }
 0x2d9   :  { %v358_v43 = vpop.f32.mrf.mxu1 }
 0x2da   :  { %v359_v44 = vadd.f32 %v358_v43, %v84_v28  ;;  %v439_v45 = vsel %vm267_vm2, %v431_v41, -inf }
 0x2db   :  { %v2953_v46 = vpop.f32.mrf.mxu1  ;;  %440 = vmax.xlane.f32.xlu0 %v439_v45 }
 0x2dc   :  { %v432_v47 = vadd.f32 %v3724_v42, %v359_v44 }
 0x2dd   :  { %v361_v49 = vpop.f32.mrf.mxu1 }
 0x2de   :  { %v362_v50 = vadd.f32 %v361_v49, %v85_v34  ;;  %v442_v51 = vsel %vm267_vm2, %v432_v47, -inf }
 0x2df   :  { %v2954_v52 = vpop.f32.mrf.mxu1  ;;  %443 = vmax.xlane.f32.xlu0 %v442_v51 }
 0x2e0   :  { %v433_v53 = vadd.f32 %v3724_v42, %v362_v50 }
 0x2e1   :  { %v408_v55 = vpop.f32.mrf.mxu1 }
 0x2e2   :  { %v409_v56 = vadd.f32 %v408_v55, %v84_v28  ;;  %v445_v57 = vsel %vm267_vm2, %v433_v53, -inf }
 0x2e3   :  { %v2959_v58 = vpop.f32.mrf.mxu1  ;;  %446 = vmax.xlane.f32.xlu0 %v445_v57 }
 0x2e4   :  { %v434_v59 = vadd.f32 %v3730_v54, %v409_v56 }
 0x2e5   :  { %v411_v60 = vpop.f32.mrf.mxu1 }
 0x2e6   :  { %v412_v61 = vadd.f32 %v411_v60, %v85_v34  ;;  %v448_v62 = vsel %vm267_vm2, %v434_v59, -inf }
 0x2e7   :  { %v2960_v63 = vpop.f32.mrf.mxu1  ;;  %449 = vmax.xlane.f32.xlu1 %v448_v62 }
 0x2e8   :  { %v435_v1 = vadd.f32 %v3730_v54, %v412_v61 }
 0x2ea   :  { %v451_v2 = vsel %vm267_vm2, %v435_v1, -inf }
 0x2eb   :  { %452 = vmax.xlane.f32.xlu0 %v451_v2 }
 0x2f8   :  { %505 = vrot.lane.b32.xlu1 %v3680_v0, %s3527_s18 }
 0x360   :  { %v438_v3 = vpop.xlane.xlu1 %437 }
 0x361   :  { %v454_v4 = vsub.f32 %v430_v35, %v438_v3 }
 0x363   :  { %v460_v6 = vmul.f32 1.442695, %v454_v4 }
 0x364   :  { %v441_v7 = vpop.xlane.xlu0 %440 }
 0x365   :  { %3285 = vpow2.f32 %v460_v6  ;;  %v455_v8 = vsub.f32 %v431_v41, %v441_v7 }
 0x367   :  { %v462_v9 = vmul.f32 1.442695, %v455_v8 }
 0x368   :  { %v444_v11 = vpop.xlane.xlu0 %443 }
 0x369   :  { %3287 = vpow2.f32 %v462_v9  ;;  %v456_v12 = vsub.f32 %v432_v47, %v444_v11 }
 0x36b   :  { %v464_v13 = vmul.f32 1.442695, %v456_v12 }
 0x36c   :  { %v447_v14 = vpop.xlane.xlu0 %446 }
 0x36d   :  { %3289 = vpow2.f32 %v464_v13  ;;  %v457_v15 = vsub.f32 %v433_v53, %v447_v14 }
 0x36f   :  { %v466_v16 = vmul.f32 1.442695, %v457_v15 }
 0x370   :  { %v450_v17 = vpop.xlane.xlu1 %449 }
 0x371   :  { %3291 = vpow2.f32 %v466_v16  ;;  %v458_v30 = vsub.f32 %v434_v59, %v450_v17 }
 0x372   :  { %v3286_v18 = vpop.eup %3285 }
 0x373   :  { %v472_v20 = vsel %vm267_vm2, %v3286_v18, 0.0  ;;  %v468_v32 = vmul.f32 1.442695, %v458_v30 }
 0x374   :  { %473 = vadd.xlane.f32.xlu1 %v472_v20  ;;  %v506_v21 = vpop.permute.xlu1 %505  ;;  %v453_v28 = vpop.xlane.xlu0 %452  ;;  %v86_v20 = vld [vmem:[%s4296_s1 + $0x10] sm:$0xff] }
 0x375   :  { %2962 = vmatpush3.bf16.msra.mxu0 %v506_v21  ;;  %v459_v31 = vsub.f32 %v435_v1, %v453_v28  ;;  %3293 = vpow2.f32 %v468_v32 }
 0x376   :  { %v3288_v22 = vpop.eup %3287  ;;  %2973 = vmatprep.subr.bf16.mxu0 %v3530_v19 }
 0x377   :  { %v475_v23 = vsel %vm267_vm2, %v3288_v22, 0.0  ;;  %v470_v33 = vmul.f32 1.442695, %v459_v31 }
 0x378   :  { %476 = vadd.xlane.f32.xlu0 %v475_v23 }
 0x379   :  { %3295 = vpow2.f32 %v470_v33 }
 0x37a   :  { %v3290_v24 = vpop.eup %3289 }
 0x37b   :  { %v478_v25 = vsel %vm267_vm2, %v3290_v24, 0.0 }
 0x37c   :  { %479 = vadd.xlane.f32.xlu1 %v478_v25 }
 0x37e   :  { %v3292_v26 = vpop.eup %3291 }
 0x37f   :  { %v481_v27 = vsel %vm267_vm2, %v3292_v26, 0.0 }
 0x380   :  { %482 = vadd.xlane.f32.xlu0 %v481_v27 }
 0x382   :  { %v3294_v34 = vpop.eup %3293 }
 0x383   :  { %v484_v36 = vsel %vm267_vm2, %v3294_v34, 0.0 }
 0x386   :  { %v3296_v35 = vpop.eup %3295 }
 0x387   :  { %v487_v37 = vsel %vm267_vm2, %v3296_v35, 0.0 }
 0x38d   :  { %648 = vrot.lane.b32.xlu1 %v3680_v0, %s3534_s2 }
 0x391   :  { %599 = vrot.lane.b32.xlu1 %v3688_v10, %s3527_s18 }
 0x396   :  { %552 = vrot.lane.b32.xlu0 %v3684_v5, %s3527_s18 }
 0x3b5   :  { %485 = vadd.xlane.f32.xlu1 %v484_v36  ;;  %488 = vadd.xlane.f32.xlu0 %v487_v37 }
 0x3c6   :  { %646 = vrot.lane.b32.xlu1 %v3680_v0, %s3535_s28 }
 0x3ca   :  { %697 = vrot.lane.b32.xlu1 %v3684_v5, %s3535_s28 }
 0x3cb   :  { %699 = vrot.lane.b32.xlu0 %v3684_v5, %s3534_s2 }
 0x3ce   :  { %748 = vrot.lane.b32.xlu1 %v3688_v10, %s3535_s28 }
 0x3cf   :  { %750 = vrot.lane.b32.xlu0 %v3688_v10, %s3534_s2 }
 0x3fd   :  { %v474_v38 = vpop.xlane.xlu1 %473 }
 0x3fe   :  { %3297 = vrcp.f32 %v474_v38 }
 0x401   :  { %v477_v39 = vpop.xlane.xlu0 %476 }
 0x402   :  { %3299 = vrcp.f32 %v477_v39 }
 0x405   :  { %v480_v40 = vpop.xlane.xlu1 %479 }
 0x406   :  { %3301 = vrcp.f32 %v480_v40 }
 0x409   :  { %v483_v41 = vpop.xlane.xlu0 %482  ;;  %v649_v45 = vpop.permute.xlu1 %648 }
 0x40a   :  { %3303 = vrcp.f32 %v483_v41  ;;  %v654_v57 = vsel %vm267_vm2, %v649_v45, 0 }
 0x40b   :  { %v3298_v43 = vpop.eup %3297 }
 0x40c   :  { %v496_v47 = vmul.f32 %v3298_v43, %v3286_v18 }
 0x40d   :  { %v553_v44 = vpop.permute.xlu0 %552  ;;  %v600_v50 = vpop.permute.xlu1 %599 }
 0x40e   :  { %2968 = vmatpush3.bf16.msra.mxu1 %v553_v44 }
 0x40f   :  { %v3300_v46 = vpop.eup %3299  ;;  %2979 = vmatprep.subr.bf16.mxu1 %v3530_v19 }
 0x410   :  { %v497_v48 = vmul.f32 %v3300_v46, %v3288_v22 }
 0x412   :  { %v502_v49 = vpack.c.bf16 %v497_v48, %v496_v47 }
 0x413   :  { %v3302_v51 = vpop.eup %3301 }
 0x414   :  { %2964 = vmatmul.mubr.msk.bf16.vlgmr.msra.gmra.mxu0 %vm267_vm2, %v502_v49  ;;  %v498_v53 = vmul.f32 %v3302_v51, %v3290_v24  ;;  %v87_v24 = vld [vmem:[%s4296_s1 + $0x18] sm:$0xff] }
 0x415   :  { %2974 = vmatpush3.bf16.msra.mxu0 %v600_v50  ;;  %2975 = vmatprep.mubr.msk.bf16.mxu0 %vm3531_vm1, %v3530_v19 }
 0x416   :  { %2985 = vmatprep.subr.bf16.mxu0 %v3530_v19 }
 0x417   :  { %v3304_v52 = vpop.eup %3303 }
 0x418   :  { %v499_v55 = vmul.f32 %v3304_v52, %v3292_v26 }
 0x41a   :  { %v503_v56 = vpack.c.bf16 %v499_v55, %v498_v53 }
 0x41c   :  { %2970 = vmatmul.mubr.msk.bf16.vlgmr.msra.gmra.mxu1 %vm267_vm2, %v503_v56 }
 0x41d   :  { %2980 = vmatpush3.bf16.xpose.msra.mxu1 %v654_v57  ;;  %2981 = vmatprep.mubr.msk.bf16.mxu1 %vm3531_vm1, %v3530_v19 }
 0x41e   :  { %2991 = vmatprep.subr.bf16.mxu1 %v3530_v19 }
 0x43e   :  { %v486_v58 = vpop.xlane.xlu1 %485  ;;  %v489_v59 = vpop.xlane.xlu0 %488 }
 0x43f   :  { %3305 = vrcp.f32 %v486_v58 }
 0x440   :  { %3307 = vrcp.f32 %v489_v59 }
 0x442   :  { %v647_v60 = vpop.permute.xlu1 %646  ;;  %v700_v61 = vpop.permute.xlu0 %699 }
 0x443   :  { %2982 = vmatmul.mubr.msk.bf16.vlgmr.msra.gmra.mxu1 %vm267_vm2, %v647_v60  ;;  %v705_v9 = vsel %vm267_vm2, %v700_v61, 0 }
 0x444   :  { %2993 = vmatprep.mubr.msk.bf16.mxu1 %vm3531_vm1, %v3530_v19 }
 0x446   :  { %v751_v62 = vpop.permute.xlu0 %750  ;;  %v698_v1 = vpop.permute.xlu1 %697 }
 0x447   :  { %v756_v63 = vsel %vm267_vm2, %v751_v62, 0 }
 0x448   :  { %2992 = vmatpush3.bf16.xpose.msra.mxu1 %v756_v63 }
 0x449   :  { %3003 = vmatprep.subr.bf16.mxu1 %v3530_v19 }
 0x44a   :  { %v749_v6 = vpop.permute.xlu1 %748 }
 0x44c   :  { %v3306_v2 = vpop.eup %3305 }
 0x44d   :  { %v3308_v3 = vpop.eup %3307  ;;  %v500_v4 = vmul.f32 %v3306_v2, %v3294_v34 }
 0x44e   :  { %v501_v7 = vmul.f32 %v3308_v3, %v3296_v35 }
 0x44f   :  { %2994 = vmatmul.mubr.msk.bf16.vlgmr.msra.gmra.mxu1 %vm267_vm2, %v749_v6 }
 0x450   :  { %v504_v8 = vpack.c.bf16 %v501_v7, %v500_v4  ;;  %3005 = vmatprep.mubr.msk.bf16.mxu1 %vm3531_vm1, %v3530_v19 }
 0x452   :  { %2976 = vmatmul.mubr.msk.bf16.vlgmr.msra.gmra.mxu0 %vm267_vm2, %v504_v8 }
 0x453   :  { %2986 = vmatpush3.bf16.xpose.msra.mxu0 %v705_v9  ;;  %2987 = vmatprep.mubr.msk.bf16.mxu0 %vm3531_vm1, %v3530_v19 }
 0x454   :  { %2997 = vmatprep.subr.bf16.mxu0 %v3530_v19 }
 0x45a   :  { %2988 = vmatmul.mubr.msk.bf16.vlgmr.msra.gmra.mxu0 %vm267_vm2, %v698_v1 }
 0x45b   :  { %2999 = vmatprep.mubr.msk.bf16.mxu0 %vm3531_vm1, %v3530_v19 }
 0x4d4   :  { %v3788_v11 = vpop.f32.mrf.mxu0 }
 0x4d6   :  { %v2965_v12 = vpop.f32.mrf.mxu0 }
 0x4d8   :  { %v3790_v13 = vpop.f32.mrf.mxu0 }
 0x4da   :  { %v2966_v14 = vpop.f32.mrf.mxu0 }
 0x4dc   :  { %v3792_v15 = vpop.f32.mrf.mxu1 }
 0x4de   :  { %v2971_v16 = vpop.f32.mrf.mxu1 }
 0x4e0   :  { %v3794_v17 = vpop.f32.mrf.mxu1 }
 0x4e2   :  { %v2972_v18 = vpop.f32.mrf.mxu1 }
 0x503   :  { %v690_v21 = vpop.f32.mrf.mxu1 }
 0x504   :  { %v691_v22 = vadd.f32 %v690_v21, %v86_v20 }
 0x505   :  { %v2983_v23 = vpop.f32.mrf.mxu1 }
 0x506   :  { %v799_v25 = vadd.f32 %v691_v22, %v3716_v29 }
 0x507   :  { %v693_v26 = vpop.f32.mrf.mxu1 }
 0x508   :  { %v694_v27 = vadd.f32 %v693_v26, %v87_v24  ;;  %v805_v28 = vsel %vm267_vm2, %v799_v25, -inf }
 0x509   :  { %806 = vmax.xlane.f32.xlu0 %v805_v28  ;;  %v2984_v30 = vpop.f32.mrf.mxu1 }
 0x50a   :  { %v800_v31 = vadd.f32 %v694_v27, %v3716_v29 }
 0x50c   :  { %v808_v32 = vsel %vm267_vm2, %v800_v31, -inf }
 0x50d   :  { %809 = vmax.xlane.f32.xlu1 %v808_v32 }
 0x50f   :  { %v792_v33 = vpop.f32.mrf.mxu1 }
 0x510   :  { %v793_v50 = vadd.f32 %v792_v33, %v86_v20 }
 0x511   :  { %v2995_v34 = vpop.f32.mrf.mxu1 }
 0x512   :  { %v3806_v35 = vpop.f32.mrf.mxu0  ;;  %v803_v57 = vadd.f32 %v793_v50, %v3730_v54 }
 0x513   :  { %v795_v36 = vpop.f32.mrf.mxu1 }
 0x514   :  { %v2977_v37 = vpop.f32.mrf.mxu0  ;;  %v796_v38 = vadd.f32 %v795_v36, %v87_v24  ;;  %v817_v58 = vsel %vm267_vm2, %v803_v57, -inf }
 0x515   :  { %v2996_v39 = vpop.f32.mrf.mxu1 }
 0x516   :  { %v3808_v40 = vpop.f32.mrf.mxu0  ;;  %v804_v41 = vadd.f32 %v796_v38, %v3730_v54 }
 0x518   :  { %v2978_v43 = vpop.f32.mrf.mxu0  ;;  %v820_v44 = vsel %vm267_vm2, %v804_v41, -inf }
 0x519   :  { %821 = vmax.xlane.f32.xlu1 %v820_v44 }
 0x51a   :  { %v741_v45 = vpop.f32.mrf.mxu0 }
 0x51b   :  { %v742_v46 = vadd.f32 %v741_v45, %v86_v20 }
 0x51c   :  { %v2989_v47 = vpop.f32.mrf.mxu0 }
 0x51d   :  { %v801_v48 = vadd.f32 %v742_v46, %v3724_v42 }
 0x51e   :  { %v744_v49 = vpop.f32.mrf.mxu0 }
 0x51f   :  { %v745_v51 = vadd.f32 %v744_v49, %v87_v24  ;;  %v811_v52 = vsel %vm267_vm2, %v801_v48, -inf }
 0x520   :  { %812 = vmax.xlane.f32.xlu0 %v811_v52  ;;  %v2990_v53 = vpop.f32.mrf.mxu0 }
 0x521   :  { %v802_v55 = vadd.f32 %v745_v51, %v3724_v42 }
 0x523   :  { %v814_v56 = vsel %vm267_vm2, %v802_v55, -inf }
 0x524   :  { %815 = vmax.xlane.f32.xlu0 %v814_v56 }
 0x528   :  { %818 = vmax.xlane.f32.xlu0 %v817_v58 }
 0x592   :  { %v807_v59 = vpop.xlane.xlu0 %806 }
 0x593   :  { %v823_v60 = vsub.f32 %v799_v25, %v807_v59  ;;  %v3255_v59 = vld [vmem:[#allocation5 + $0x8] sm:$0xff]  }
 0x595   :  { %v829_v61 = vmul.f32 1.442695, %v823_v60  ;;  %v3256_v60 = vld [vmem:[#allocation5] sm:$0xff]  }
 0x596   :  { %v810_v62 = vpop.xlane.xlu1 %809 }
 0x597   :  { %3309 = vpow2.f32 %v829_v61  ;;  %v824_v63 = vsub.f32 %v800_v31, %v810_v62 }
 0x599   :  { %v831_v1 = vmul.f32 1.442695, %v824_v63 }
 0x59b   :  { %3311 = vpow2.f32 %v831_v1 }
 0x5a2   :  { %v822_v25 = vpop.xlane.xlu1 %821 }
 0x5a3   :  { %v828_v26 = vsub.f32 %v804_v41, %v822_v25 }
 0x5a4   :  { %v3310_v2 = vpop.eup %3309 }
 0x5a5   :  { %v841_v3 = vsel %vm267_vm2, %v3310_v2, 0.0  ;;  %v839_v28 = vmul.f32 1.442695, %v828_v26 }
 0x5a6   :  { %842 = vadd.xlane.f32.xlu0 %v841_v3 }
 0x5a8   :  { %v3312_v4 = vpop.eup %3311 }
 0x5a9   :  { %v813_v6 = vpop.xlane.xlu0 %812  ;;  %v844_v7 = vsel %vm267_vm2, %v3312_v4, 0.0 }
 0x5aa   :  { %v825_v8 = vsub.f32 %v801_v48, %v813_v6  ;;  %845 = vadd.xlane.f32.xlu1 %v844_v7 }
 0x5ac   :  { %v833_v9 = vmul.f32 1.442695, %v825_v8 }
 0x5ad   :  { %v816_v12 = vpop.xlane.xlu0 %815 }
 0x5ae   :  { %3313 = vpow2.f32 %v833_v9  ;;  %v826_v24 = vsub.f32 %v802_v55, %v816_v12 }
 0x5b0   :  { %v835_v27 = vmul.f32 1.442695, %v826_v24 }
 0x5b1   :  { %v819_v14 = vpop.xlane.xlu0 %818 }
 0x5b2   :  { %v827_v16 = vsub.f32 %v803_v57, %v819_v14 }
 0x5b4   :  { %v837_v18 = vmul.f32 1.442695, %v827_v16 }
 0x5b6   :  { %3315 = vpow2.f32 %v837_v18 }
 0x5b7   :  { %3317 = vpow2.f32 %v835_v27 }
 0x5b8   :  { %3319 = vpow2.f32 %v839_v28 }
 0x5bb   :  { %v3314_v20 = vpop.eup %3313  ;;  %921 = vrot.lane.b32.xlu1 %v3684_v5, %s3536_s12 }
 0x5bc   :  { %v847_v21 = vsel %vm267_vm2, %v3314_v20, 0.0 }
 0x5bd   :  { %848 = vadd.xlane.f32.xlu0 %v847_v21 }
 0x5c3   :  { %v3316_v22 = vpop.eup %3315 }
 0x5c4   :  { %v853_v23 = vsel %vm267_vm2, %v3316_v22, 0.0  ;;  %v3318_v30 = vpop.eup %3317 }
 0x5c5   :  { %854 = vadd.xlane.f32.xlu0 %v853_v23  ;;  %v850_v5 = vsel %vm267_vm2, %v3318_v30, 0.0  ;;  %v3320_v31 = vpop.eup %3319 }
 0x5c6   :  { %v856_v32 = vsel %vm267_vm2, %v3320_v31, 0.0 }
 0x5db   :  { %874 = vrot.lane.b32.xlu0 %v3680_v0, %s3536_s12 }
 0x5df   :  { %851 = vadd.xlane.f32.xlu1 %v850_v5 }
 0x5e3   :  { %857 = vadd.xlane.f32.xlu1 %v856_v32 }
 0x5f4   :  { %968 = vrot.lane.b32.xlu1 %v3688_v10, %s3536_s12 }
 0x62f   :  { %v843_v36 = vpop.xlane.xlu0 %842 }
 0x633   :  { %v846_v33 = vpop.xlane.xlu1 %845 }
 0x634   :  { %3321 = vrcp.f32 %v846_v33 }
 0x635   :  { %3323 = vrcp.f32 %v843_v36 }
 0x637   :  { %v922_v34 = vpop.permute.xlu1 %921 }
 0x638   :  { %3004 = vmatpush3.bf16.msra.mxu1 %v922_v34 }
 0x639   :  { %3015 = vmatprep.subr.bf16.mxu1 %v3530_v19 }
 0x641   :  { %v3322_v0 = vpop.eup %3321 }
 0x642   :  { %v3324_v39 = vpop.eup %3323  ;;  %v866_v41 = vmul.f32 %v3322_v0, %v3312_v4 }
 0x643   :  { %v865_v44 = vmul.f32 %v3324_v39, %v3310_v2 }
 0x645   :  { %v871_v45 = vpack.c.bf16 %v866_v41, %v865_v44 }
 0x646   :  { %v849_v37 = vpop.xlane.xlu0 %848 }
 0x647   :  { %3325 = vrcp.f32 %v849_v37 }
 0x64e   :  { %v855_v38 = vpop.xlane.xlu0 %854 }
 0x652   :  { %v875_v43 = vpop.permute.xlu0 %874 }
 0x653   :  { %2998 = vmatpush3.bf16.msra.mxu0 %v875_v43 }
 0x654   :  { %3009 = vmatprep.subr.bf16.mxu0 %v3530_v19  ;;  %v3326_v48 = vpop.eup %3325 }
 0x655   :  { %v867_v50 = vmul.f32 %v3326_v48, %v3314_v20 }
 0x656   :  { %3000 = vmatmul.mubr.msk.bf16.vlgmr.msra.gmra.mxu0 %vm267_vm2, %v871_v45 }
 0x657   :  { %3011 = vmatprep.mubr.msk.bf16.mxu0 %vm3531_vm1, %v3530_v19 }
 0x668   :  { %v852_v10 = vpop.xlane.xlu1 %851 }
 0x669   :  { %3327 = vrcp.f32 %v852_v10  ;;  %v3257_v10 = vld [vmem:[#allocation7 + $0x8] sm:$0xff]  }
 0x66a   :  { %3329 = vrcp.f32 %v855_v38 }
 0x66c   :  { %v858_v46 = vpop.xlane.xlu1 %857 }
 0x66d   :  { %3331 = vrcp.f32 %v858_v46 }
 0x670   :  { %v969_v47 = vpop.permute.xlu1 %968 }
 0x671   :  { %3010 = vmatpush3.bf16.msra.mxu0 %v969_v47  ;;  %v3431_v47 = vld [vmem:[%s4295_s0 + $0x10] sm:$0xff] }
 0x672   :  { %3031 = vmatprep.subr.bf16.mxu0 %v3530_v19 }
 0x676   :  { %v3328_v49 = vpop.eup %3327 }
 0x677   :  { %v868_v51 = vmul.f32 %v3328_v49, %v3318_v30  ;;  %v3330_v52 = vpop.eup %3329  ;;  %v3258_v49 = vld [vmem:[#allocation7] sm:$0xff]  }
 0x678   :  { %v869_v56 = vmul.f32 %v3330_v52, %v3316_v22 }
 0x679   :  { %v872_v53 = vpack.c.bf16 %v868_v51, %v867_v50 }
 0x67a   :  { %v3332_v55 = vpop.eup %3331 }
 0x67b   :  { %3006 = vmatmul.mubr.msk.bf16.vlgmr.msra.gmra.mxu1 %vm267_vm2, %v872_v53  ;;  %v870_v57 = vmul.f32 %v3332_v55, %v3320_v31  ;;  %v3432_v53 = vld [vmem:[%s4295_s0 + $0x18] sm:$0xff] }
 0x67c   :  { %3019 = vmatprep.mubr.msk.bf16.mxu1 %vm3531_vm1, %v3530_v19  ;;  %3016 = vmatpush3.bf16.msra.mxu1 %v3255_v59 }
 0x67d   :  { %v873_v58 = vpack.c.bf16 %v870_v57, %v869_v56  ;;  %3017 = vmatprep.subr.bf16.mxu1 %v3530_v19 }
 0x67f   :  { %3012 = vmatmul.mubr.msk.bf16.vlgmr.msra.gmra.mxu0 %vm267_vm2, %v873_v58 }
 0x680   :  { %3035 = vmatprep.mubr.msk.bf16.mxu0 %vm3531_vm1, %v3530_v19  ;;  %3018 = vmatpush3.bf16.msra.mxu1 %v3256_v60  ;;  %v3433_v60 = vld [vmem:[%s4295_s0 + $0x20] sm:$0xff] }
 0x681   :  { %3047 = vmatprep.subr.bf16.mxu1 %v3530_v19  ;;  %3032 = vmatpush3.bf16.msra.mxu0 %v3257_v10 }
 0x682   :  { %3033 = vmatprep.subr.bf16.mxu0 %v3530_v19 }
 0x685   :  { %3034 = vmatpush3.bf16.msra.mxu0 %v3258_v49 }
 0x686   :  { %3067 = vmatprep.subr.bf16.mxu0 %v3530_v19 }
 0x716   :  { %v914_v61 = vpop.f32.mrf.mxu0 }
 0x718   :  { %v3001_v62 = vpop.f32.mrf.mxu0 }
 0x71a   :  { %v917_v63 = vpop.f32.mrf.mxu0 }
 0x71b   :  { %v3223_v1 = vpack.i.bf16 %v917_v63, %v914_v61 }
 0x71c   :  { %v3002_v2 = vpop.f32.mrf.mxu0 }
 0x71d   :  { %3224 = vrot.lane.b32.xlu1 %v3223_v1, %s3537_s13 }
 0x73b   :  { %v961_v3 = vpop.f32.mrf.mxu1 }
 0x73d   :  { %v3007_v4 = vpop.f32.mrf.mxu1 }
 0x73f   :  { %v964_v6 = vpop.f32.mrf.mxu1  ;;  %v1008_v7 = vpop.f32.mrf.mxu0 }
 0x740   :  { %v3228_v8 = vpack.i.bf16 %v964_v6, %v961_v3  ;;  %v3434_v3 = vld [vmem:[%s4295_s0 + $0x28] sm:$0xff] }
 0x741   :  { %v3008_v9 = vpop.f32.mrf.mxu1  ;;  %v3013_v12 = vpop.f32.mrf.mxu0 }
 0x742   :  { %3229 = vrot.lane.b32.xlu0 %v3228_v8, %s3537_s13  ;;  %v3259_v12 = vld [vmem:[%s4303_s8 + $0x18] sm:$0xff]  }
 0x743   :  { %v1011_v14 = vpop.f32.mrf.mxu0 }
 0x744   :  { %v3233_v16 = vpack.i.bf16 %v1011_v14, %v1008_v7  ;;  %v3260_v14 = vld [vmem:[%s4303_s8 + $0x10] sm:$0xff]  }
 0x745   :  { %v3014_v18 = vpop.f32.mrf.mxu0 }
 0x746   :  { %3234 = vrot.lane.b32.xlu1 %v3233_v16, %s3537_s13 }
 0x78f   :  { %v3225_v20 = vpop.permute.xlu1 %3224 }
 0x790   :  { %v3227_v21 = vunpack.i.h.bf16 %v3225_v20  ;;  %v3226_v22 = vunpack.i.l.bf16 %v3225_v20 }
 0x792   :  { %v1040_v23 = vsel %vm267_vm2, %v3790_v13, %v3227_v21  ;;  %v1039_v24 = vsel %vm267_vm2, %v3788_v11, %v3226_v22 }
 0x793   :  { %v1045_v25 = vpack.c.bf16 %v1040_v23, %v1039_v24 }
 0x795   :  { %3020 = vmatmul.mubr.msk.bf16.vlgmr.msra.gmra.mxu1 %vm120_vm0, %v1045_v25 }
 0x796   :  { %3023 = vmatprep.mubr.msk.bf16.mxu1 %vm3531_vm1, %v3530_v19  ;;  %3048 = vmatpush3.bf16.msra.mxu1 %v3259_v12 }
 0x797   :  { %3049 = vmatprep.subr.bf16.mxu1 %v3530_v19 }
 0x79a   :  { %3050 = vmatpush3.bf16.msra.mxu1 %v3260_v14 }
 0x79b   :  { %3051 = vmatprep.subr.bf16.mxu1 %v3530_v19 }
 0x7b4   :  { %v3230_v26 = vpop.permute.xlu0 %3229 }
 0x7b5   :  { %v3232_v27 = vunpack.i.h.bf16 %v3230_v26  ;;  %v3231_v28 = vunpack.i.l.bf16 %v3230_v26 }
 0x7b7   :  { %v1042_v30 = vsel %vm267_vm2, %v3794_v17, %v3232_v27  ;;  %v1041_v5 = vsel %vm267_vm2, %v3792_v15, %v3231_v28  ;;  %v3429_v17 = vld [vmem:[%s4295_s0] sm:$0xff] }
 0x7b8   :  { %v1046_v31 = vpack.c.bf16 %v1042_v30, %v1041_v5  ;;  %v3235_v13 = vpop.permute.xlu1 %3234  ;;  %v2775_v27 = vld [vmem:[%s4301_s6] ss:$0 sm:$0xff] }
 0x7b9   :  { %v3237_v32 = vunpack.i.h.bf16 %v3235_v13  ;;  %v3236_v33 = vunpack.i.l.bf16 %v3235_v13 }
 0x7ba   :  { %3024 = vmatmul.mubr.msk.bf16.gmra.mxu1 %vm120_vm0, %v1046_v31 }
 0x7bb   :  { %3027 = vmatprep.mubr.msk.bf16.mxu1 %vm3531_vm1, %v3530_v19  ;;  %v1044_v11 = vsel %vm267_vm2, %v3808_v40, %v3237_v32  ;;  %v1043_v34 = vsel %vm267_vm2, %v3806_v35, %v3236_v33  ;;  %v3430_v35 = vld [vmem:[%s4295_s0 + $0x8] sm:$0xff] }
 0x7bc   :  { %v1047_v36 = vpack.c.bf16 %v1044_v11, %v1043_v34 }
 0x7c2   :  { %3028 = vmatmul.mubr.msk.bf16.gmra.mxu1 %vm120_vm0, %v1047_v36 }
 0x7c3   :  { %3055 = vmatprep.mubr.msk.bf16.mxu1 %vm3531_vm1, %v3530_v19 }
 0x855   :  { %v1107_v15 = vpop.f32.mrf.mxu1 }
 0x856   :  { %v3871_v37 = vadd.f32 %v3429_v17, %v1107_v15 }
 0x857   :  { %v3021_v0 = vpop.f32.mrf.mxu1 }
 0x858   :  { %v1137_v40 = vmul.f32 %v3871_v37, %v3871_v37 }
 0x859   :  { %v1110_v38 = vpop.f32.mrf.mxu1 }
 0x85a   :  { %v3878_v39 = vadd.f32 %v3430_v35, %v1110_v38  ;;  %v1143_v41 = vsel %vm120_vm0, %v1137_v40, 0.0 }
 0x85b   :  { %1144 = vadd.xlane.f32.xlu0 %v1143_v41  ;;  %v3022_v43 = vpop.f32.mrf.mxu1 }
 0x85c   :  { %v1138_v44 = vmul.f32 %v3878_v39, %v3878_v39 }
 0x85e   :  { %v1146_v45 = vsel %vm120_vm0, %v1138_v44, 0.0 }
 0x85f   :  { %1147 = vadd.xlane.f32.xlu1 %v1146_v45 }
 0x87a   :  { %v1115_v46 = vpop.f32.mrf.mxu1 }
 0x87b   :  { %v3887_v48 = vadd.f32 %v3431_v47, %v1115_v46 }
 0x87c   :  { %v3025_v50 = vpop.f32.mrf.mxu1 }
 0x87d   :  { %v1139_v51 = vmul.f32 %v3887_v48, %v3887_v48 }
 0x87e   :  { %v1118_v52 = vpop.f32.mrf.mxu1 }
 0x87f   :  { %v3895_v55 = vadd.f32 %v3432_v53, %v1118_v52  ;;  %v1149_v56 = vsel %vm120_vm0, %v1139_v51, 0.0 }
 0x880   :  { %1150 = vadd.xlane.f32.xlu0 %v1149_v56  ;;  %v3026_v57 = vpop.f32.mrf.mxu1 }
 0x881   :  { %v1140_v58 = vmul.f32 %v3895_v55, %v3895_v55 }
 0x882   :  { %v1123_v59 = vpop.f32.mrf.mxu1 }
 0x883   :  { %v3904_v61 = vadd.f32 %v3433_v60, %v1123_v59  ;;  %v1152_v62 = vsel %vm120_vm0, %v1140_v58, 0.0  ;;  %v3261_v58 = vld [vmem:[%s4303_s8 + $0x8] sm:$0xff]   ;;  %v3262_v59 = vld [vmem:[%s4303_s8] sm:$0xff]  }
 0x884   :  { %1153 = vadd.xlane.f32.xlu0 %v1152_v62  ;;  %v3029_v63 = vpop.f32.mrf.mxu1  ;;  %3052 = vmatpush3.bf16.msra.mxu1 %v3261_v58 }
 0x885   :  { %v1141_v1 = vmul.f32 %v3904_v61, %v3904_v61  ;;  %3053 = vmatprep.subr.bf16.mxu1 %v3530_v19 }
 0x886   :  { %v1126_v2 = vpop.f32.mrf.mxu1 }
 0x887   :  { %v3912_v4 = vadd.f32 %v3434_v3, %v1126_v2  ;;  %v1155_v6 = vsel %vm120_vm0, %v1141_v1, 0.0 }
 0x888   :  { %1156 = vadd.xlane.f32.xlu0 %v1155_v6  ;;  %v3030_v7 = vpop.f32.mrf.mxu1  ;;  %3054 = vmatpush3.bf16.msra.mxu1 %v3262_v59 }
 0x889   :  { %v1142_v8 = vmul.f32 %v3912_v4, %v3912_v4  ;;  %3083 = vmatprep.subr.bf16.mxu1 %v3530_v19 }
 0x88b   :  { %v1158_v9 = vsel %vm120_vm0, %v1142_v8, 0.0 }
 0x88c   :  { %1159 = vadd.xlane.f32.xlu1 %v1158_v9 }
 0x8e4   :  { %v1145_v16 = vpop.xlane.xlu0 %1144 }
 0x8e5   :  { %v1161_v18 = vmul.f32 0.03125, %v1145_v16 }
 0x8e7   :  { %v1167_v20 = vadd.f32 1e-06, %v1161_v18 }
 0x8e8   :  { %v1148_v21 = vpop.xlane.xlu1 %1147 }
 0x8e9   :  { %3333 = vrsqrt.f32 %v1167_v20  ;;  %v1162_v22 = vmul.f32 0.03125, %v1148_v21 }
 0x8eb   :  { %v1168_v23 = vadd.f32 1e-06, %v1162_v22 }
 0x8ed   :  { %3335 = vrsqrt.f32 %v1168_v23 }
 0x8f6   :  { %v3334_v24 = vpop.eup %3333 }
 0x8f7   :  { %v1179_v25 = vmul.f32 %v3334_v24, %v3871_v37 }
 0x8f9   :  { %v1191_v30 = vmul.f32 %v2775_v27, %v1179_v25 }
 0x8fa   :  { %v3336_v26 = vpop.eup %3335 }
 0x8fb   :  { %v1180_v28 = vmul.f32 %v3336_v26, %v3878_v39 }
 0x8fd   :  { %v1192_v5 = vmul.f32 %v2775_v27, %v1180_v28 }
 0x8ff   :  { %v1197_v31 = vpack.c.bf16 %v1192_v5, %v1191_v30 }
 0x901   :  { %3036 = vmatmul.mubr.msk.bf16.vlgmr.msra.gmra.mxu0 %vm120_vm0, %v1197_v31 }
 0x902   :  { %3039 = vmatprep.mubr.msk.bf16.mxu0 %vm3531_vm1, %v3530_v19 }
 0x909   :  { %v1151_v13 = vpop.xlane.xlu0 %1150 }
 0x90a   :  { %v1163_v32 = vmul.f32 0.03125, %v1151_v13 }
 0x90c   :  { %v1169_v33 = vadd.f32 1e-06, %v1163_v32 }
 0x90d   :  { %v1154_v11 = vpop.xlane.xlu0 %1153 }
 0x90e   :  { %3337 = vrsqrt.f32 %v1169_v33  ;;  %v1164_v34 = vmul.f32 0.03125, %v1154_v11 }
 0x910   :  { %v1170_v36 = vadd.f32 1e-06, %v1164_v34 }
 0x911   :  { %v1157_v15 = vpop.xlane.xlu0 %1156 }
 0x912   :  { %3339 = vrsqrt.f32 %v1170_v36  ;;  %v1165_v17 = vmul.f32 0.03125, %v1157_v15 }
 0x914   :  { %v1171_v0 = vadd.f32 1e-06, %v1165_v17 }
 0x915   :  { %v1160_v40 = vpop.xlane.xlu1 %1159 }
 0x916   :  { %3341 = vrsqrt.f32 %v1171_v0  ;;  %v1166_v38 = vmul.f32 0.03125, %v1160_v40  ;;  %v3264_v0 = vld [vmem:[#allocation2 + $0x10] sm:$0xff]  }
 0x918   :  { %v1172_v35 = vadd.f32 1e-06, %v1166_v38 }
 0x91a   :  { %3343 = vrsqrt.f32 %v1172_v35 }
 0x91b   :  { %v3338_v41 = vpop.eup %3337 }
 0x91c   :  { %v1181_v43 = vmul.f32 %v3338_v41, %v3887_v48 }
 0x91e   :  { %v1193_v10 = vmul.f32 %v2775_v27, %v1181_v43 }
 0x91f   :  { %v3340_v44 = vpop.eup %3339 }
 0x920   :  { %v1182_v45 = vmul.f32 %v3340_v44, %v3895_v55 }
 0x922   :  { %v1194_v46 = vmul.f32 %v2775_v27, %v1182_v45 }
 0x923   :  { %v3342_v47 = vpop.eup %3341 }
 0x924   :  { %v1198_v49 = vpack.c.bf16 %v1194_v46, %v1193_v10  ;;  %v1183_v50 = vmul.f32 %v3342_v47, %v3904_v61 }
 0x926   :  { %3040 = vmatmul.mubr.msk.bf16.gmra.mxu0 %vm120_vm0, %v1198_v49  ;;  %v1195_v53 = vmul.f32 %v2775_v27, %v1183_v50 }
 0x927   :  { %v3344_v51 = vpop.eup %3343  ;;  %3043 = vmatprep.mubr.msk.bf16.mxu0 %vm3531_vm1, %v3530_v19 }
 0x928   :  { %v1184_v52 = vmul.f32 %v3344_v51, %v3912_v4 }
 0x92a   :  { %v1196_v56 = vmul.f32 %v2775_v27, %v1184_v52 }
 0x92c   :  { %v1199_v57 = vpack.c.bf16 %v1196_v56, %v1195_v53 }
 0x92e   :  { %3044 = vmatmul.mubr.msk.bf16.gmra.mxu0 %vm120_vm0, %v1199_v57 }
 0x92f   :  { %3071 = vmatprep.mubr.msk.bf16.mxu0 %vm3531_vm1, %v3530_v19 }
 0x9c1   :  { %v1259_v60 = vpop.f32.mrf.mxu0 }
 0x9c2   :  { %v1282_v1 = vmax.f32 %v1259_v60, 0.0 }
 0x9c3   :  { %v3037_v62 = vpop.f32.mrf.mxu0 }
 0x9c5   :  { %v1262_v63 = vpop.f32.mrf.mxu0 }
 0x9c6   :  { %v1283_v2 = vmax.f32 %v1262_v63, 0.0  ;;  %v2789_v63 = vld [vmem:[%s4298_s3 + $0x1] ss:$0 sm:$0xff] }
 0x9c7   :  { %v3038_v3 = vpop.f32.mrf.mxu0 }
 0x9c8   :  { %v1288_v6 = vpack.c.bf16 %v1283_v2, %v1282_v1 }
 0x9ca   :  { %3056 = vmatmul.mubr.msk.bf16.vlgmr.msra.gmra.mxu1 %vm1323_vm3, %v1288_v6 }
 0x9cb   :  { %3059 = vmatprep.mubr.msk.bf16.mxu1 %vm3531_vm1, %v3530_v19 }
 0x9e6   :  { %v1267_v7 = vpop.f32.mrf.mxu0 }
 0x9e7   :  { %v1284_v12 = vmax.f32 %v1267_v7, 0.0 }
 0x9e8   :  { %v3041_v8 = vpop.f32.mrf.mxu0 }
 0x9ea   :  { %v1270_v9 = vpop.f32.mrf.mxu0 }
 0x9eb   :  { %v1285_v14 = vmax.f32 %v1270_v9, 0.0 }
 0x9ec   :  { %v3042_v16 = vpop.f32.mrf.mxu0 }
 0x9ed   :  { %v1289_v18 = vpack.c.bf16 %v1285_v14, %v1284_v12 }
 0x9ee   :  { %v1275_v20 = vpop.f32.mrf.mxu0 }
 0x9ef   :  { %3060 = vmatmul.mubr.msk.bf16.gmra.mxu1 %vm1323_vm3, %v1289_v18  ;;  %v1286_v23 = vmax.f32 %v1275_v20, 0.0 }
 0x9f0   :  { %v3045_v21 = vpop.f32.mrf.mxu0  ;;  %3063 = vmatprep.mubr.msk.bf16.mxu1 %vm3531_vm1, %v3530_v19 }
 0x9f2   :  { %v1278_v22 = vpop.f32.mrf.mxu0 }
 0x9f3   :  { %v1287_v24 = vmax.f32 %v1278_v22, 0.0 }
 0x9f4   :  { %v3046_v25 = vpop.f32.mrf.mxu0 }
 0x9f5   :  { %v1290_v26 = vpack.c.bf16 %v1287_v24, %v1286_v23 }
 0x9f7   :  { %3064 = vmatmul.mubr.msk.bf16.gmra.mxu1 %vm1323_vm3, %v1290_v26 }
 0x9f8   :  { %3085 = vmatprep.mubr.msk.bf16.mxu1 %vm3531_vm1, %v3530_v19 }
 0xa8a   :  { %v1367_v27 = vpop.f32.mrf.mxu1 }
 0xa8b   :  { %v3962_v28 = vadd.f32 %v1367_v27, %v3871_v37  ;;  %v3263_v37 = vld [vmem:[#allocation2 + $0x18] sm:$0xff]  }
 0xa8c   :  { %v3057_v30 = vpop.f32.mrf.mxu1  ;;  %3068 = vmatpush3.bf16.msra.mxu0 %v3263_v37 }
 0xa8d   :  { %v1398_v5 = vmul.f32 %v3962_v28, %v3962_v28  ;;  %3069 = vmatprep.subr.bf16.mxu0 %v3530_v19 }
 0xa8e   :  { %v1370_v31 = vpop.f32.mrf.mxu1 }
 0xa8f   :  { %v3967_v13 = vadd.f32 %v1370_v31, %v3878_v39  ;;  %v1404_v32 = vsel %vm120_vm0, %v1398_v5, 0.0 }
 0xa90   :  { %1405 = vadd.xlane.f32.xlu0 %v1404_v32  ;;  %v3058_v33 = vpop.f32.mrf.mxu1  ;;  %3070 = vmatpush3.bf16.msra.mxu0 %v3264_v0 }
 0xa91   :  { %v1399_v11 = vmul.f32 %v3967_v13, %v3967_v13  ;;  %3089 = vmatprep.subr.bf16.mxu0 %v3530_v19 }
 0xa93   :  { %v1407_v34 = vsel %vm120_vm0, %v1399_v11, 0.0 }
 0xa94   :  { %1408 = vadd.xlane.f32.xlu1 %v1407_v34 }
 0xaaf   :  { %v1375_v36 = vpop.f32.mrf.mxu1 }
 0xab0   :  { %v3974_v15 = vadd.f32 %v1375_v36, %v3887_v48 }
 0xab1   :  { %v3061_v17 = vpop.f32.mrf.mxu1 }
 0xab2   :  { %v1400_v39 = vmul.f32 %v3974_v15, %v3974_v15 }
 0xab3   :  { %v1378_v40 = vpop.f32.mrf.mxu1 }
 0xab4   :  { %v3980_v38 = vadd.f32 %v1378_v40, %v3895_v55  ;;  %v1410_v35 = vsel %vm120_vm0, %v1400_v39, 0.0 }
 0xab5   :  { %1411 = vadd.xlane.f32.xlu0 %v1410_v35  ;;  %v3062_v41 = vpop.f32.mrf.mxu1 }
 0xab6   :  { %v1401_v48 = vmul.f32 %v3980_v38, %v3980_v38 }
 0xab7   :  { %v1383_v43 = vpop.f32.mrf.mxu1 }
 0xab8   :  { %v3987_v44 = vadd.f32 %v1383_v43, %v3904_v61  ;;  %v1413_v45 = vsel %vm120_vm0, %v1401_v48, 0.0 }
 0xab9   :  { %1414 = vadd.xlane.f32.xlu1 %v1413_v45  ;;  %v3065_v10 = vpop.f32.mrf.mxu1 }
 0xaba   :  { %v1402_v55 = vmul.f32 %v3987_v44, %v3987_v44 }
 0xabb   :  { %v1386_v46 = vpop.f32.mrf.mxu1 }
 0xabc   :  { %v3993_v47 = vadd.f32 %v1386_v46, %v3912_v4  ;;  %v1416_v49 = vsel %vm120_vm0, %v1402_v55, 0.0 }
 0xabd   :  { %1417 = vadd.xlane.f32.xlu0 %v1416_v49  ;;  %v3066_v50 = vpop.f32.mrf.mxu1 }
 0xabe   :  { %v1403_v51 = vmul.f32 %v3993_v47, %v3993_v47 }
 0xac0   :  { %v1419_v61 = vsel %vm120_vm0, %v1403_v51, 0.0 }
 0xac1   :  { %1420 = vadd.xlane.f32.xlu1 %v1419_v61 }
 0xb19   :  { %v1406_v52 = vpop.xlane.xlu0 %1405 }
 0xb1a   :  { %v1422_v53 = vmul.f32 0.03125, %v1406_v52 }
 0xb1c   :  { %v1428_v56 = vadd.f32 1e-06, %v1422_v53 }
 0xb1d   :  { %v1409_v57 = vpop.xlane.xlu1 %1408 }
 0xb1e   :  { %3345 = vrsqrt.f32 %v1428_v56  ;;  %v1423_v58 = vmul.f32 0.03125, %v1409_v57 }
 0xb20   :  { %v1429_v59 = vadd.f32 1e-06, %v1423_v58 }
 0xb22   :  { %3347 = vrsqrt.f32 %v1429_v59 }
 0xb2b   :  { %v3346_v4 = vpop.eup %3345 }
 0xb2c   :  { %v1440_v60 = vmul.f32 %v3346_v4, %v3962_v28 }
 0xb2e   :  { %v1452_v2 = vmul.f32 %v2789_v63, %v1440_v60 }
 0xb2f   :  { %v3348_v62 = vpop.eup %3347 }
 0xb30   :  { %v1441_v1 = vmul.f32 %v3348_v62, %v3967_v13  ;;  %v3435_v62 = vld [vmem:[%s4296_s1] sm:$0xff] }
 0xb32   :  { %v1453_v3 = vmul.f32 %v2789_v63, %v1441_v1 }
 0xb34   :  { %v1458_v6 = vpack.c.bf16 %v1453_v3, %v1452_v2 }
 0xb36   :  { %3072 = vmatmul.mubr.msk.bf16.vlgmr.msra.gmra.mxu0 %vm120_vm0, %v1458_v6  ;;  %v3436_v6 = vld [vmem:[%s4296_s1 + $0x8] sm:$0xff] }
 0xb37   :  { %3075 = vmatprep.mubr.msk.bf16.mxu0 %vm3531_vm1, %v3530_v19 }
 0xb3e   :  { %v1412_v7 = vpop.xlane.xlu0 %1411 }
 0xb3f   :  { %v1424_v8 = vmul.f32 0.03125, %v1412_v7 }
 0xb41   :  { %v1430_v9 = vadd.f32 1e-06, %v1424_v8 }
 0xb42   :  { %v1415_v12 = vpop.xlane.xlu1 %1414 }
 0xb43   :  { %3349 = vrsqrt.f32 %v1430_v9  ;;  %v1425_v14 = vmul.f32 0.03125, %v1415_v12 }
 0xb45   :  { %v1431_v16 = vadd.f32 1e-06, %v1425_v14 }
 0xb46   :  { %v1418_v18 = vpop.xlane.xlu0 %1417 }
 0xb47   :  { %3351 = vrsqrt.f32 %v1431_v16  ;;  %v1426_v20 = vmul.f32 0.03125, %v1418_v18 }
 0xb49   :  { %v1432_v21 = vadd.f32 1e-06, %v1426_v20 }
 0xb4a   :  { %v1421_v22 = vpop.xlane.xlu1 %1420 }
 0xb4b   :  { %3353 = vrsqrt.f32 %v1432_v21  ;;  %v1427_v23 = vmul.f32 0.03125, %v1421_v22 }
 0xb4d   :  { %v1433_v24 = vadd.f32 1e-06, %v1427_v23 }
 0xb4f   :  { %3355 = vrsqrt.f32 %v1433_v24 }
 0xb50   :  { %v3350_v25 = vpop.eup %3349 }
 0xb51   :  { %v1442_v26 = vmul.f32 %v3350_v25, %v3974_v15 }
 0xb53   :  { %v1454_v5 = vmul.f32 %v2789_v63, %v1442_v26 }
 0xb54   :  { %v3352_v27 = vpop.eup %3351 }
 0xb55   :  { %v1443_v30 = vmul.f32 %v3352_v27, %v3980_v38 }
 0xb57   :  { %v1455_v31 = vmul.f32 %v2789_v63, %v1443_v30 }
 0xb58   :  { %v3354_v32 = vpop.eup %3353 }
 0xb59   :  { %v1459_v33 = vpack.c.bf16 %v1455_v31, %v1454_v5  ;;  %v1444_v11 = vmul.f32 %v3354_v32, %v3987_v44 }
 0xb5b   :  { %3076 = vmatmul.mubr.msk.bf16.gmra.mxu0 %vm120_vm0, %v1459_v33  ;;  %v1456_v36 = vmul.f32 %v2789_v63, %v1444_v11 }
 0xb5c   :  { %v3356_v34 = vpop.eup %3355  ;;  %3079 = vmatprep.mubr.msk.bf16.mxu0 %vm3531_vm1, %v3530_v19 }
 0xb5d   :  { %v1445_v37 = vmul.f32 %v3356_v34, %v3993_v47 }
 0xb5f   :  { %v1457_v17 = vmul.f32 %v2789_v63, %v1445_v37 }
 0xb61   :  { %v1460_v39 = vpack.c.bf16 %v1457_v17, %v1456_v36 }
 0xb63   :  { %3080 = vmatmul.mubr.msk.bf16.gmra.mxu0 %vm120_vm0, %v1460_v39 }
 0xb64   :  { %3091 = vmatprep.mubr.msk.bf16.mxu0 %vm3531_vm1, %v3530_v19 }
 0xbf6   :  { %v1521_v0 = vpop.f32.mrf.mxu0 }
 0xbf8   :  { %v3073_v40 = vpop.f32.mrf.mxu0 }
 0xbfa   :  { %v1524_v35 = vpop.f32.mrf.mxu0 }
 0xbfb   :  { %v4017_v41 = vpack.c.bf16 %v1524_v35, %v1521_v0 }
 0xbfc   :  { %v3074_v48 = vpop.f32.mrf.mxu0 }
 0xbfd   :  { %1548 = vrot.lane.b32.xlu0 %v4017_v41, %s3532_s22 }
 0xc1b   :  { %v1529_v43 = vpop.f32.mrf.mxu0 }
 0xc1d   :  { %v3077_v45 = vpop.f32.mrf.mxu0 }
 0xc1f   :  { %v1532_v10 = vpop.f32.mrf.mxu0 }
 0xc20   :  { %v4021_v55 = vpack.c.bf16 %v1532_v10, %v1529_v43 }
 0xc21   :  { %v3078_v46 = vpop.f32.mrf.mxu0 }
 0xc22   :  { %1598 = vrot.lane.b32.xlu1 %v4021_v55, %s3532_s22 }
 0xc23   :  { %v1537_v49 = vpop.f32.mrf.mxu0 }
 0xc25   :  { %v3081_v50 = vpop.f32.mrf.mxu0 }
 0xc27   :  { %v1540_v51 = vpop.f32.mrf.mxu0 }
 0xc28   :  { %v4025_v61 = vpack.c.bf16 %v1540_v51, %v1537_v49 }
 0xc29   :  { %v3082_v52 = vpop.f32.mrf.mxu0 }
 0xc2a   :  { %1648 = vrot.lane.b32.xlu1 %v4025_v61, %s3532_s22 }
 0xc6f   :  { %v1549_v53 = vpop.permute.xlu0 %1548 }
 0xc70   :  { %v1554_v56 = vsel %vm267_vm2, %v1549_v53, 0 }
 0xc71   :  { %3084 = vmatpush3.bf16.xpose.msra.mxu1 %v1554_v56 }
 0xc72   :  { %3095 = vmatprep.subr.bf16.mxu1 %v3530_v19 }
 0xc78   :  { %3086 = vmatmul.mubr.msk.bf16.vlgmr.msra.gmra.mxu1 %vm267_vm2, %v4017_v41 }
 0xc79   :  { %3097 = vmatprep.mubr.msk.bf16.mxu1 %vm3531_vm1, %v3530_v19 }
 0xc94   :  { %v1599_v57 = vpop.permute.xlu1 %1598 }
 0xc95   :  { %v1604_v58 = vsel %vm267_vm2, %v1599_v57, 0 }
 0xc96   :  { %3090 = vmatpush3.bf16.xpose.msra.mxu0 %v1604_v58 }
 0xc97   :  { %3101 = vmatprep.subr.bf16.mxu0 %v3530_v19 }
 0xc9c   :  { %v1649_v59 = vpop.permute.xlu1 %1648 }
 0xc9d   :  { %v1654_v4 = vsel %vm267_vm2, %v1649_v59, 0  ;;  %3092 = vmatmul.mubr.msk.bf16.vlgmr.msra.gmra.mxu0 %vm267_vm2, %v4021_v55 }
 0xc9e   :  { %3096 = vmatpush3.bf16.xpose.msra.mxu1 %v1654_v4  ;;  %3103 = vmatprep.mubr.msk.bf16.mxu0 %vm3531_vm1, %v3530_v19 }
 0xc9f   :  { %3107 = vmatprep.subr.bf16.mxu1 %v3530_v19 }
 0xca5   :  { %3098 = vmatmul.mubr.msk.bf16.vlgmr.msra.gmra.mxu1 %vm267_vm2, %v4025_v61 }
 0xca6   :  { %3109 = vmatprep.mubr.msk.bf16.mxu1 %vm3531_vm1, %v3530_v19 }
 0xd38   :  { %v1590_v60 = vpop.f32.mrf.mxu1 }
 0xd39   :  { %v1591_v63 = vadd.f32 %v3435_v62, %v1590_v60 }
 0xd3a   :  { %v3087_v1 = vpop.f32.mrf.mxu1 }
 0xd3b   :  { %v1697_v2 = vadd.f32 %v1591_v63, %v3716_v29 }
 0xd3c   :  { %v1593_v3 = vpop.f32.mrf.mxu1 }
 0xd3d   :  { %v1594_v7 = vadd.f32 %v3436_v6, %v1593_v3  ;;  %v1703_v8 = vsel %vm267_vm2, %v1697_v2, -inf }
 0xd3e   :  { %v3088_v9 = vpop.f32.mrf.mxu1  ;;  %1704 = vmax.xlane.f32.xlu1 %v1703_v8 }
 0xd3f   :  { %v1698_v12 = vadd.f32 %v1594_v7, %v3716_v29 }
 0xd41   :  { %v1706_v14 = vsel %vm267_vm2, %v1698_v12, -inf }
 0xd42   :  { %1707 = vmax.xlane.f32.xlu0 %v1706_v14 }
 0xd5d   :  { %v1640_v16 = vpop.f32.mrf.mxu0 }
 0xd5e   :  { %v1641_v18 = vadd.f32 %v3435_v62, %v1640_v16 }
 0xd5f   :  { %v3093_v20 = vpop.f32.mrf.mxu0 }
 0xd60   :  { %v1699_v21 = vadd.f32 %v1641_v18, %v3724_v42 }
 0xd61   :  { %v1643_v22 = vpop.f32.mrf.mxu0 }
 0xd62   :  { %v1644_v23 = vadd.f32 %v3436_v6, %v1643_v22  ;;  %v1709_v24 = vsel %vm267_vm2, %v1699_v21, -inf }
 0xd63   :  { %1710 = vmax.xlane.f32.xlu0 %v1709_v24  ;;  %v3094_v25 = vpop.f32.mrf.mxu0 }
 0xd64   :  { %v1700_v26 = vadd.f32 %v1644_v23, %v3724_v42 }
 0xd65   :  { %v1690_v27 = vpop.f32.mrf.mxu1 }
 0xd66   :  { %v1691_v30 = vadd.f32 %v3435_v62, %v1690_v27  ;;  %v1712_v5 = vsel %vm267_vm2, %v1700_v26, -inf }
 0xd67   :  { %v3099_v31 = vpop.f32.mrf.mxu1  ;;  %1713 = vmax.xlane.f32.xlu0 %v1712_v5 }
 0xd68   :  { %v1701_v32 = vadd.f32 %v1691_v30, %v3730_v54 }
 0xd69   :  { %v1693_v33 = vpop.f32.mrf.mxu1 }
 0xd6a   :  { %v1694_v11 = vadd.f32 %v3436_v6, %v1693_v33  ;;  %v1715_v34 = vsel %vm267_vm2, %v1701_v32, -inf }
 0xd6b   :  { %1716 = vmax.xlane.f32.xlu1 %v1715_v34  ;;  %v3100_v37 = vpop.f32.mrf.mxu1 }
 0xd6c   :  { %v1702_v36 = vadd.f32 %v1694_v11, %v3730_v54 }
 0xd6e   :  { %v1718_v17 = vsel %vm267_vm2, %v1702_v36, -inf }
 0xd6f   :  { %1719 = vmax.xlane.f32.xlu0 %v1718_v17 }
 0xd7c   :  { %1772 = vrot.lane.b32.xlu1 %v4017_v41, %s3527_s18 }
 0xdc7   :  { %v1705_v39 = vpop.xlane.xlu1 %1704 }
 0xdc8   :  { %v1721_v0 = vsub.f32 %v1697_v2, %v1705_v39 }
 0xdca   :  { %v1727_v40 = vmul.f32 1.442695, %v1721_v0 }
 0xdcb   :  { %v1708_v35 = vpop.xlane.xlu0 %1707 }
 0xdcc   :  { %3357 = vpow2.f32 %v1727_v40  ;;  %v1722_v48 = vsub.f32 %v1698_v12, %v1708_v35 }
 0xdce   :  { %v1729_v43 = vmul.f32 1.442695, %v1722_v48 }
 0xdd0   :  { %3359 = vpow2.f32 %v1729_v43 }
 0xdd9   :  { %v3358_v45 = vpop.eup %3357 }
 0xdda   :  { %v1739_v10 = vsel %vm267_vm2, %v3358_v45, 0.0 }
 0xddb   :  { %1740 = vadd.xlane.f32.xlu1 %v1739_v10 }
 0xddd   :  { %v3360_v46 = vpop.eup %3359 }
 0xdde   :  { %v1742_v49 = vsel %vm267_vm2, %v3360_v46, 0.0 }
 0xddf   :  { %1743 = vadd.xlane.f32.xlu0 %v1742_v49 }
 0xdec   :  { %v1711_v50 = vpop.xlane.xlu0 %1710 }
 0xded   :  { %v1723_v51 = vsub.f32 %v1699_v21, %v1711_v50 }
 0xdef   :  { %v1731_v52 = vmul.f32 1.442695, %v1723_v51 }
 0xdf0   :  { %v1714_v53 = vpop.xlane.xlu0 %1713 }
 0xdf1   :  { %3361 = vpow2.f32 %v1731_v52  ;;  %v1724_v56 = vsub.f32 %v1700_v26, %v1714_v53 }
 0xdf3   :  { %v1733_v57 = vmul.f32 1.442695, %v1724_v56 }
 0xdf4   :  { %v1717_v58 = vpop.xlane.xlu1 %1716 }
 0xdf5   :  { %3363 = vpow2.f32 %v1733_v57  ;;  %v1725_v2 = vsub.f32 %v1701_v32, %v1717_v58 }
 0xdf7   :  { %v1735_v6 = vmul.f32 1.442695, %v1725_v2 }
 0xdf8   :  { %v1773_v59 = vpop.permute.xlu1 %1772  ;;  %v1720_v1 = vpop.xlane.xlu0 %1719 }
 0xdf9   :  { %3102 = vmatpush3.bf16.msra.mxu0 %v1773_v59  ;;  %v1726_v3 = vsub.f32 %v1702_v36, %v1720_v1  ;;  %3365 = vpow2.f32 %v1735_v6 }
 0xdfa   :  { %3113 = vmatprep.subr.bf16.mxu0 %v3530_v19 }
 0xdfb   :  { %v1737_v7 = vmul.f32 1.442695, %v1726_v3 }
 0xdfd   :  { %3367 = vpow2.f32 %v1737_v7  ;;  %v3438_v7 = vld [vmem:[%s4296_s1 + $0x18] sm:$0xff] }
 0xdfe   :  { %v3362_v4 = vpop.eup %3361 }
 0xdff   :  { %v1745_v60 = vsel %vm267_vm2, %v3362_v4, 0.0 }
 0xe00   :  { %1746 = vadd.xlane.f32.xlu1 %v1745_v60 }
 0xe02   :  { %v3364_v62 = vpop.eup %3363 }
 0xe03   :  { %v1748_v63 = vsel %vm267_vm2, %v3364_v62, 0.0 }
 0xe04   :  { %1749 = vadd.xlane.f32.xlu0 %v1748_v63  ;;  %v3437_v63 = vld [vmem:[%s4296_s1 + $0x10] sm:$0xff] }
 0xe06   :  { %v3366_v8 = vpop.eup %3365 }
 0xe07   :  { %v1751_v12 = vsel %vm267_vm2, %v3366_v8, 0.0 }
 0xe0a   :  { %v3368_v9 = vpop.eup %3367 }
 0xe0b   :  { %v1754_v14 = vsel %vm267_vm2, %v3368_v9, 0.0 }
 0xe11   :  { %1915 = vrot.lane.b32.xlu1 %v4017_v41, %s3534_s2 }
 0xe15   :  { %1866 = vrot.lane.b32.xlu1 %v4025_v61, %s3527_s18 }
 0xe1a   :  { %1819 = vrot.lane.b32.xlu0 %v4021_v55, %s3527_s18 }
 0xe39   :  { %1752 = vadd.xlane.f32.xlu1 %v1751_v12  ;;  %1755 = vadd.xlane.f32.xlu0 %v1754_v14 }
 0xe4a   :  { %1913 = vrot.lane.b32.xlu1 %v4017_v41, %s3535_s28 }
 0xe4e   :  { %1964 = vrot.lane.b32.xlu1 %v4021_v55, %s3535_s28 }
 0xe4f   :  { %1966 = vrot.lane.b32.xlu0 %v4021_v55, %s3534_s2 }
 0xe52   :  { %2015 = vrot.lane.b32.xlu1 %v4025_v61, %s3535_s28 }
 0xe53   :  { %2017 = vrot.lane.b32.xlu0 %v4025_v61, %s3534_s2 }
 0xe64   :  { %v1741_v16 = vpop.xlane.xlu1 %1740 }
 0xe65   :  { %3369 = vrcp.f32 %v1741_v16 }
 0xe68   :  { %v1744_v18 = vpop.xlane.xlu0 %1743 }
 0xe69   :  { %3371 = vrcp.f32 %v1744_v18 }
 0xe72   :  { %v3370_v20 = vpop.eup %3369 }
 0xe73   :  { %v1763_v22 = vmul.f32 %v3370_v20, %v3358_v45 }
 0xe76   :  { %v3372_v21 = vpop.eup %3371 }
 0xe77   :  { %v1764_v23 = vmul.f32 %v3372_v21, %v3360_v46 }
 0xe79   :  { %v1769_v24 = vpack.c.bf16 %v1764_v23, %v1763_v22 }
 0xe7b   :  { %3104 = vmatmul.mubr.msk.bf16.vlgmr.msra.gmra.mxu0 %vm267_vm2, %v1769_v24 }
 0xe7c   :  { %3115 = vmatprep.mubr.msk.bf16.mxu0 %vm3531_vm1, %v3530_v19 }
 0xe89   :  { %v1747_v25 = vpop.xlane.xlu1 %1746 }
 0xe8a   :  { %3373 = vrcp.f32 %v1747_v25 }
 0xe8d   :  { %v1916_v26 = vpop.permute.xlu1 %1915  ;;  %v1750_v27 = vpop.xlane.xlu0 %1749 }
 0xe8e   :  { %3375 = vrcp.f32 %v1750_v27  ;;  %v1921_v37 = vsel %vm267_vm2, %v1916_v26, 0 }
 0xe91   :  { %v1867_v30 = vpop.permute.xlu1 %1866  ;;  %v1820_v5 = vpop.permute.xlu0 %1819 }
 0xe92   :  { %3108 = vmatpush3.bf16.msra.mxu1 %v1820_v5  ;;  %3114 = vmatpush3.bf16.msra.mxu0 %v1867_v30 }
 0xe93   :  { %3119 = vmatprep.subr.bf16.mxu1 %v3530_v19  ;;  %3125 = vmatprep.subr.bf16.mxu0 %v3530_v19 }
 0xe97   :  { %v3374_v31 = vpop.eup %3373 }
 0xe98   :  { %v1765_v33 = vmul.f32 %v3374_v31, %v3362_v4 }
 0xe9b   :  { %v3376_v32 = vpop.eup %3375 }
 0xe9c   :  { %v1766_v11 = vmul.f32 %v3376_v32, %v3364_v62 }
 0xe9e   :  { %v1770_v34 = vpack.c.bf16 %v1766_v11, %v1765_v33 }
 0xea0   :  { %3110 = vmatmul.mubr.msk.bf16.vlgmr.msra.gmra.mxu1 %vm267_vm2, %v1770_v34 }
 0xea1   :  { %3120 = vmatpush3.bf16.xpose.msra.mxu1 %v1921_v37  ;;  %3121 = vmatprep.mubr.msk.bf16.mxu1 %vm3531_vm1, %v3530_v19 }
 0xea2   :  { %3131 = vmatprep.subr.bf16.mxu1 %v3530_v19 }
 0xec2   :  { %v1753_v36 = vpop.xlane.xlu1 %1752  ;;  %v1756_v17 = vpop.xlane.xlu0 %1755 }
 0xec3   :  { %3377 = vrcp.f32 %v1753_v36 }
 0xec4   :  { %3379 = vrcp.f32 %v1756_v17 }
 0xec6   :  { %v1914_v39 = vpop.permute.xlu1 %1913  ;;  %v1967_v0 = vpop.permute.xlu0 %1966 }
 0xec7   :  { %3122 = vmatmul.mubr.msk.bf16.vlgmr.msra.gmra.mxu1 %vm267_vm2, %v1914_v39  ;;  %v1972_v51 = vsel %vm267_vm2, %v1967_v0, 0 }
 0xec8   :  { %3133 = vmatprep.mubr.msk.bf16.mxu1 %vm3531_vm1, %v3530_v19 }
 0xeca   :  { %v2018_v40 = vpop.permute.xlu0 %2017  ;;  %v1965_v48 = vpop.permute.xlu1 %1964 }
 0xecb   :  { %v2023_v35 = vsel %vm267_vm2, %v2018_v40, 0 }
 0xecc   :  { %3132 = vmatpush3.bf16.xpose.msra.mxu1 %v2023_v35 }
 0xecd   :  { %3143 = vmatprep.subr.bf16.mxu1 %v3530_v19 }
 0xece   :  { %v2016_v46 = vpop.permute.xlu1 %2015 }
 0xed0   :  { %v3378_v43 = vpop.eup %3377 }
 0xed1   :  { %v3380_v45 = vpop.eup %3379  ;;  %v1767_v10 = vmul.f32 %v3378_v43, %v3366_v8 }
 0xed2   :  { %v1768_v49 = vmul.f32 %v3380_v45, %v3368_v9 }
 0xed3   :  { %3134 = vmatmul.mubr.msk.bf16.vlgmr.msra.gmra.mxu1 %vm267_vm2, %v2016_v46 }
 0xed4   :  { %v1771_v50 = vpack.c.bf16 %v1768_v49, %v1767_v10  ;;  %3145 = vmatprep.mubr.msk.bf16.mxu1 %vm3531_vm1, %v3530_v19 }
 0xed6   :  { %3116 = vmatmul.mubr.msk.bf16.vlgmr.msra.gmra.mxu0 %vm267_vm2, %v1771_v50 }
 0xed7   :  { %3126 = vmatpush3.bf16.xpose.msra.mxu0 %v1972_v51  ;;  %3127 = vmatprep.mubr.msk.bf16.mxu0 %vm3531_vm1, %v3530_v19 }
 0xed8   :  { %3137 = vmatprep.subr.bf16.mxu0 %v3530_v19 }
 0xede   :  { %3128 = vmatmul.mubr.msk.bf16.vlgmr.msra.gmra.mxu0 %vm267_vm2, %v1965_v48 }
 0xedf   :  { %3139 = vmatprep.mubr.msk.bf16.mxu0 %vm3531_vm1, %v3530_v19 }
 0xf3b   :  { %v4116_v52 = vpop.f32.mrf.mxu0 }
 0xf3d   :  { %v3105_v53 = vpop.f32.mrf.mxu0 }
 0xf3f   :  { %v4118_v56 = vpop.f32.mrf.mxu0 }
 0xf41   :  { %v3106_v57 = vpop.f32.mrf.mxu0 }
 0xf60   :  { %v4120_v58 = vpop.f32.mrf.mxu1 }
 0xf62   :  { %v3111_v59 = vpop.f32.mrf.mxu1 }
 0xf64   :  { %v4122_v4 = vpop.f32.mrf.mxu1 }
 0xf66   :  { %v3112_v60 = vpop.f32.mrf.mxu1 }
 0xf87   :  { %v1957_v62 = vpop.f32.mrf.mxu1 }
 0xf88   :  { %v1958_v1 = vadd.f32 %v3437_v63, %v1957_v62 }
 0xf89   :  { %v3123_v2 = vpop.f32.mrf.mxu1 }
 0xf8a   :  { %v2066_v3 = vadd.f32 %v1958_v1, %v3716_v29 }
 0xf8b   :  { %v1960_v6 = vpop.f32.mrf.mxu1 }
 0xf8c   :  { %v1961_v8 = vadd.f32 %v3438_v7, %v1960_v6  ;;  %v2072_v9 = vsel %vm267_vm2, %v2066_v3, -inf }
 0xf8d   :  { %2073 = vmax.xlane.f32.xlu0 %v2072_v9  ;;  %v3124_v12 = vpop.f32.mrf.mxu1 }
 0xf8e   :  { %v2067_v14 = vadd.f32 %v1961_v8, %v3716_v29 }
 0xf90   :  { %v2075_v16 = vsel %vm267_vm2, %v2067_v14, -inf }
 0xf91   :  { %2076 = vmax.xlane.f32.xlu1 %v2075_v16 }
 0xf93   :  { %v2059_v18 = vpop.f32.mrf.mxu1 }
 0xf94   :  { %v2060_v34 = vadd.f32 %v3437_v63, %v2059_v18 }
 0xf95   :  { %v3135_v20 = vpop.f32.mrf.mxu1 }
 0xf96   :  { %v4134_v21 = vpop.f32.mrf.mxu0  ;;  %v2070_v40 = vadd.f32 %v2060_v34, %v3730_v54 }
 0xf97   :  { %v2062_v22 = vpop.f32.mrf.mxu1 }
 0xf98   :  { %v3117_v23 = vpop.f32.mrf.mxu0  ;;  %v2063_v24 = vadd.f32 %v3438_v7, %v2062_v22  ;;  %v2084_v35 = vsel %vm267_vm2, %v2070_v40, -inf }
 0xf99   :  { %v3136_v25 = vpop.f32.mrf.mxu1 }
 0xf9a   :  { %v4136_v26 = vpop.f32.mrf.mxu0  ;;  %v2071_v27 = vadd.f32 %v2063_v24, %v3730_v54 }
 0xf9c   :  { %v3118_v30 = vpop.f32.mrf.mxu0  ;;  %v2087_v5 = vsel %vm267_vm2, %v2071_v27, -inf }
 0xf9d   :  { %2088 = vmax.xlane.f32.xlu1 %v2087_v5 }
 0xf9e   :  { %v2008_v29 = vpop.f32.mrf.mxu0 }
 0xf9f   :  { %v2009_v31 = vadd.f32 %v3437_v63, %v2008_v29 }
 0xfa0   :  { %v3129_v32 = vpop.f32.mrf.mxu0 }
 0xfa1   :  { %v2068_v33 = vadd.f32 %v2009_v31, %v3724_v42 }
 0xfa2   :  { %v2011_v11 = vpop.f32.mrf.mxu0 }
 0xfa3   :  { %v2012_v37 = vadd.f32 %v3438_v7, %v2011_v11  ;;  %v2078_v36 = vsel %vm267_vm2, %v2068_v33, -inf }
 0xfa4   :  { %2079 = vmax.xlane.f32.xlu0 %v2078_v36  ;;  %v3130_v17 = vpop.f32.mrf.mxu0 }
 0xfa5   :  { %v2069_v39 = vadd.f32 %v2012_v37, %v3724_v42 }
 0xfa7   :  { %v2081_v0 = vsel %vm267_vm2, %v2069_v39, -inf }
 0xfa8   :  { %2082 = vmax.xlane.f32.xlu0 %v2081_v0 }
 0xfac   :  { %2085 = vmax.xlane.f32.xlu0 %v2084_v35 }
0x1016   :  { %v2074_v48 = vpop.xlane.xlu0 %2073 }
0x1017   :  { %v2090_v43 = vsub.f32 %v2066_v3, %v2074_v48 }
0x1019   :  { %v2096_v45 = vmul.f32 1.442695, %v2090_v43 }
0x101a   :  { %v2077_v10 = vpop.xlane.xlu1 %2076 }
0x101b   :  { %3381 = vpow2.f32 %v2096_v45  ;;  %v2091_v46 = vsub.f32 %v2067_v14, %v2077_v10  ;;  %v3265_v10 = vld [vmem:[#allocation5 + $0x18] sm:$0xff]  }
0x101d   :  { %v2098_v49 = vmul.f32 1.442695, %v2091_v46  ;;  %v3266_v46 = vld [vmem:[#allocation5 + $0x10] sm:$0xff]  }
0x101f   :  { %3383 = vpow2.f32 %v2098_v49 }
0x1026   :  { %v2089_v9 = vpop.xlane.xlu1 %2088 }
0x1027   :  { %v2095_v12 = vsub.f32 %v2071_v27, %v2089_v9 }
0x1028   :  { %v3382_v50 = vpop.eup %3381 }
0x1029   :  { %v2108_v51 = vsel %vm267_vm2, %v3382_v50, 0.0  ;;  %v2106_v16 = vmul.f32 1.442695, %v2095_v12 }
0x102a   :  { %2109 = vadd.xlane.f32.xlu0 %v2108_v51 }
0x102c   :  { %v3384_v42 = vpop.eup %3383 }
0x102d   :  { %v2080_v53 = vpop.xlane.xlu0 %2079  ;;  %v2111_v54 = vsel %vm267_vm2, %v3384_v42, 0.0 }
0x102e   :  { %v2092_v57 = vsub.f32 %v2068_v33, %v2080_v53  ;;  %2112 = vadd.xlane.f32.xlu1 %v2111_v54 }
0x1030   :  { %v2100_v59 = vmul.f32 1.442695, %v2092_v57 }
0x1031   :  { %v2083_v60 = vpop.xlane.xlu0 %2082 }
0x1032   :  { %3385 = vpow2.f32 %v2100_v59  ;;  %v2093_v8 = vsub.f32 %v2069_v39, %v2083_v60 }
0x1034   :  { %v2102_v14 = vmul.f32 1.442695, %v2093_v8 }
0x1035   :  { %v2086_v62 = vpop.xlane.xlu0 %2085 }
0x1036   :  { %v2094_v63 = vsub.f32 %v2070_v40, %v2086_v62 }
0x1038   :  { %v2104_v1 = vmul.f32 1.442695, %v2094_v63 }
0x103a   :  { %3387 = vpow2.f32 %v2104_v1 }
0x103b   :  { %3389 = vpow2.f32 %v2102_v14 }
0x103c   :  { %3391 = vpow2.f32 %v2106_v16 }
0x103f   :  { %v3386_v2 = vpop.eup %3385  ;;  %2188 = vrot.lane.b32.xlu1 %v4021_v55, %s3536_s12 }
0x1040   :  { %v2114_v3 = vsel %vm267_vm2, %v3386_v2, 0.0 }
0x1041   :  { %2115 = vadd.xlane.f32.xlu0 %v2114_v3 }
0x1047   :  { %v3388_v6 = vpop.eup %3387 }
0x1048   :  { %v2120_v7 = vsel %vm267_vm2, %v3388_v6, 0.0  ;;  %v3390_v18 = vpop.eup %3389 }
0x1049   :  { %2121 = vadd.xlane.f32.xlu0 %v2120_v7  ;;  %v2117_v55 = vsel %vm267_vm2, %v3390_v18, 0.0  ;;  %v3392_v20 = vpop.eup %3391 }
0x104a   :  { %v2123_v22 = vsel %vm267_vm2, %v3392_v20, 0.0 }
0x105f   :  { %2141 = vrot.lane.b32.xlu0 %v4017_v41, %s3536_s12 }
0x1063   :  { %2118 = vadd.xlane.f32.xlu1 %v2117_v55 }
0x1067   :  { %2124 = vadd.xlane.f32.xlu1 %v2123_v22 }
0x1078   :  { %2235 = vrot.lane.b32.xlu1 %v4025_v61, %s3536_s12 }
0x10b3   :  { %v2110_v25 = vpop.xlane.xlu0 %2109 }
0x10b7   :  { %v2113_v23 = vpop.xlane.xlu1 %2112 }
0x10b8   :  { %3393 = vrcp.f32 %v2113_v23 }
0x10b9   :  { %3395 = vrcp.f32 %v2110_v25 }
0x10bb   :  { %v2189_v24 = vpop.permute.xlu1 %2188 }
0x10bc   :  { %3144 = vmatpush3.bf16.msra.mxu1 %v2189_v24 }
0x10bd   :  { %3155 = vmatprep.subr.bf16.mxu1 %v3530_v19 }
0x10c5   :  { %v3394_v41 = vpop.eup %3393 }
0x10c6   :  { %v3396_v5 = vpop.eup %3395  ;;  %v2133_v29 = vmul.f32 %v3394_v41, %v3384_v42 }
0x10c7   :  { %v2132_v32 = vmul.f32 %v3396_v5, %v3382_v50 }
0x10c9   :  { %v2138_v33 = vpack.c.bf16 %v2133_v29, %v2132_v32 }
0x10ca   :  { %v2116_v27 = vpop.xlane.xlu0 %2115 }
0x10cb   :  { %3397 = vrcp.f32 %v2116_v27 }
0x10d2   :  { %v2122_v30 = vpop.xlane.xlu0 %2121 }
0x10d6   :  { %v2142_v31 = vpop.permute.xlu0 %2141 }
0x10d7   :  { %3138 = vmatpush3.bf16.msra.mxu0 %v2142_v31 }
0x10d8   :  { %3149 = vmatprep.subr.bf16.mxu0 %v3530_v19  ;;  %v3398_v37 = vpop.eup %3397 }
0x10d9   :  { %v2134_v17 = vmul.f32 %v3398_v37, %v3386_v2  ;;  %v3268_v37 = vld [vmem:[#allocation7 + $0x10] sm:$0xff]  }
0x10da   :  { %3140 = vmatmul.mubr.msk.bf16.vlgmr.msra.gmra.mxu0 %vm267_vm2, %v2138_v33 }
0x10db   :  { %3151 = vmatprep.mubr.msk.bf16.mxu0 %vm3531_vm1, %v3530_v19 }
0x10ec   :  { %v2119_v61 = vpop.xlane.xlu1 %2118 }
0x10ed   :  { %3399 = vrcp.f32 %v2119_v61 }
0x10ee   :  { %3401 = vrcp.f32 %v2122_v30 }
0x10f0   :  { %v2125_v11 = vpop.xlane.xlu1 %2124 }
0x10f1   :  { %3403 = vrcp.f32 %v2125_v11 }
0x10f4   :  { %v2236_v34 = vpop.permute.xlu1 %2235 }
0x10f5   :  { %3150 = vmatpush3.bf16.msra.mxu0 %v2236_v34 }
0x10f6   :  { %3171 = vmatprep.subr.bf16.mxu0 %v3530_v19 }
0x10fa   :  { %v3400_v36 = vpop.eup %3399 }
0x10fb   :  { %v2135_v39 = vmul.f32 %v3400_v36, %v3390_v18  ;;  %v3402_v0 = vpop.eup %3401 }
0x10fc   :  { %v2136_v48 = vmul.f32 %v3402_v0, %v3388_v6 }
0x10fd   :  { %v2139_v40 = vpack.c.bf16 %v2135_v39, %v2134_v17 }
0x10fe   :  { %v3404_v35 = vpop.eup %3403 }
0x10ff   :  { %3146 = vmatmul.mubr.msk.bf16.vlgmr.msra.gmra.mxu1 %vm267_vm2, %v2139_v40  ;;  %v2137_v43 = vmul.f32 %v3404_v35, %v3392_v20 }
0x1100   :  { %3159 = vmatprep.mubr.msk.bf16.mxu1 %vm3531_vm1, %v3530_v19  ;;  %3156 = vmatpush3.bf16.msra.mxu1 %v3265_v10 }
0x1101   :  { %v2140_v45 = vpack.c.bf16 %v2137_v43, %v2136_v48  ;;  %3157 = vmatprep.subr.bf16.mxu1 %v3530_v19 }
0x1103   :  { %3152 = vmatmul.mubr.msk.bf16.vlgmr.msra.gmra.mxu0 %vm267_vm2, %v2140_v45 }
0x1104   :  { %3175 = vmatprep.mubr.msk.bf16.mxu0 %vm3531_vm1, %v3530_v19  ;;  %3158 = vmatpush3.bf16.msra.mxu1 %v3266_v46 }
0x1105   :  { %3187 = vmatprep.subr.bf16.mxu1 %v3530_v19 }
0x119a   :  { %v2181_v49 = vpop.f32.mrf.mxu0 }
0x119c   :  { %v3141_v50 = vpop.f32.mrf.mxu0 }
0x119e   :  { %v2184_v51 = vpop.f32.mrf.mxu0 }
0x119f   :  { %v3238_v42 = vpack.i.bf16 %v2184_v51, %v2181_v49 }
0x11a0   :  { %v3142_v53 = vpop.f32.mrf.mxu0 }
0x11a1   :  { %3239 = vrot.lane.b32.xlu1 %v3238_v42, %s3537_s13  ;;  %v3269_v42 = vld [vmem:[%s4303_s8 + $0x38] sm:$0xff]  }
0x11bf   :  { %v2228_v54 = vpop.f32.mrf.mxu1 }
0x11c1   :  { %v3147_v57 = vpop.f32.mrf.mxu1 }
0x11c3   :  { %v2231_v59 = vpop.f32.mrf.mxu1  ;;  %v2275_v60 = vpop.f32.mrf.mxu0 }
0x11c4   :  { %v3243_v62 = vpack.i.bf16 %v2231_v59, %v2228_v54 }
0x11c5   :  { %v3148_v63 = vpop.f32.mrf.mxu1  ;;  %v3153_v1 = vpop.f32.mrf.mxu0 }
0x11c6   :  { %3244 = vrot.lane.b32.xlu0 %v3243_v62, %s3537_s13 }
0x11c7   :  { %v2278_v2 = vpop.f32.mrf.mxu0 }
0x11c8   :  { %v3248_v3 = vpack.i.bf16 %v2278_v2, %v2275_v60 }
0x11c9   :  { %v3154_v6 = vpop.f32.mrf.mxu0 }
0x11ca   :  { %3249 = vrot.lane.b32.xlu1 %v3248_v3, %s3537_s13  ;;  %v2813_v3 = vld [vmem:[%s4301_s6 + $0x1] ss:$0 sm:$0xff] }
0x1213   :  { %v3240_v7 = vpop.permute.xlu1 %3239 }
0x1214   :  { %v3242_v8 = vunpack.i.h.bf16 %v3240_v7  ;;  %v3241_v9 = vunpack.i.l.bf16 %v3240_v7 }
0x1216   :  { %v2307_v12 = vsel %vm267_vm2, %v4118_v56, %v3242_v8  ;;  %v2306_v14 = vsel %vm267_vm2, %v4116_v52, %v3241_v9 }
0x1217   :  { %v2312_v16 = vpack.c.bf16 %v2307_v12, %v2306_v14 }
0x1219   :  { %3160 = vmatmul.mubr.msk.bf16.vlgmr.msra.gmra.mxu1 %vm120_vm0, %v2312_v16 }
0x121a   :  { %3163 = vmatprep.mubr.msk.bf16.mxu1 %vm3531_vm1, %v3530_v19  ;;  %3188 = vmatpush3.bf16.msra.mxu1 %v3269_v42 }
0x121b   :  { %3189 = vmatprep.subr.bf16.mxu1 %v3530_v19 }
0x1238   :  { %v3245_v18 = vpop.permute.xlu0 %3244 }
0x1239   :  { %v3247_v55 = vunpack.i.h.bf16 %v3245_v18  ;;  %v3246_v20 = vunpack.i.l.bf16 %v3245_v18 }
0x123b   :  { %v2309_v22 = vsel %vm267_vm2, %v4122_v4, %v3247_v55  ;;  %v2308_v23 = vsel %vm267_vm2, %v4120_v58, %v3246_v20 }
0x123c   :  { %v2313_v24 = vpack.c.bf16 %v2309_v22, %v2308_v23  ;;  %v3250_v56 = vpop.permute.xlu1 %3249 }
0x123d   :  { %v3252_v25 = vunpack.i.h.bf16 %v3250_v56  ;;  %v3251_v27 = vunpack.i.l.bf16 %v3250_v56 }
0x123e   :  { %3164 = vmatmul.mubr.msk.bf16.gmra.mxu1 %vm120_vm0, %v2313_v24 }
0x123f   :  { %3167 = vmatprep.mubr.msk.bf16.mxu1 %vm3531_vm1, %v3530_v19  ;;  %v2311_v52 = vsel %vm267_vm2, %v4136_v26, %v3252_v25  ;;  %v2310_v41 = vsel %vm267_vm2, %v4134_v21, %v3251_v27 }
0x1240   :  { %v2314_v30 = vpack.c.bf16 %v2311_v52, %v2310_v41 }
0x1246   :  { %3168 = vmatmul.mubr.msk.bf16.gmra.mxu1 %vm120_vm0, %v2314_v30 }
0x1247   :  { %3195 = vmatprep.mubr.msk.bf16.mxu1 %vm3531_vm1, %v3530_v19 }
0x12d9   :  { %v2375_v58 = vpop.f32.mrf.mxu1 }
0x12da   :  { %v4197_v4 = vadd.f32 %v2375_v58, %v3962_v28  ;;  %v3267_v28 = vld [vmem:[#allocation7 + $0x18] sm:$0xff]  }
0x12db   :  { %v3161_v5 = vpop.f32.mrf.mxu1  ;;  %3172 = vmatpush3.bf16.msra.mxu0 %v3267_v28 }
0x12dc   :  { %v2406_v29 = vmul.f32 %v4197_v4, %v4197_v4  ;;  %3173 = vmatprep.subr.bf16.mxu0 %v3530_v19 }
0x12dd   :  { %v2378_v31 = vpop.f32.mrf.mxu1 }
0x12de   :  { %v4202_v26 = vadd.f32 %v2378_v31, %v3967_v13  ;;  %v2412_v21 = vsel %vm120_vm0, %v2406_v29, 0.0 }
0x12df   :  { %2413 = vadd.xlane.f32.xlu0 %v2412_v21  ;;  %v3162_v32 = vpop.f32.mrf.mxu1  ;;  %3174 = vmatpush3.bf16.msra.mxu0 %v3268_v37 }
0x12e0   :  { %v2407_v33 = vmul.f32 %v4202_v26, %v4202_v26 }
0x12e2   :  { %v2415_v61 = vsel %vm120_vm0, %v2407_v33, 0.0 }
0x12e3   :  { %2416 = vadd.xlane.f32.xlu1 %v2415_v61 }
0x12fe   :  { %v2383_v11 = vpop.f32.mrf.mxu1 }
0x12ff   :  { %v4209_v34 = vadd.f32 %v2383_v11, %v3974_v15 }
0x1300   :  { %v3165_v36 = vpop.f32.mrf.mxu1 }
0x1301   :  { %v2408_v13 = vmul.f32 %v4209_v34, %v4209_v34  ;;  %v3271_v36 = vld [vmem:[%s4303_s8 + $0x28] sm:$0xff]  }
0x1302   :  { %v2386_v17 = vpop.f32.mrf.mxu1 }
0x1303   :  { %v4215_v39 = vadd.f32 %v2386_v17, %v3980_v38  ;;  %v2418_v0 = vsel %vm120_vm0, %v2408_v13, 0.0  ;;  %v3272_v13 = vld [vmem:[%s4303_s8 + $0x20] sm:$0xff]  }
0x1304   :  { %2419 = vadd.xlane.f32.xlu0 %v2418_v0  ;;  %v3166_v40 = vpop.f32.mrf.mxu1 }
0x1305   :  { %v2409_v15 = vmul.f32 %v4215_v39, %v4215_v39 }
0x1306   :  { %v2391_v35 = vpop.f32.mrf.mxu1 }
0x1307   :  { %v4221_v48 = vadd.f32 %v2391_v35, %v3987_v44  ;;  %v2421_v43 = vsel %vm120_vm0, %v2409_v15, 0.0 }
0x1308   :  { %2422 = vadd.xlane.f32.xlu0 %v2421_v43  ;;  %v3169_v45 = vpop.f32.mrf.mxu1 }
0x1309   :  { %v2410_v38 = vmul.f32 %v4221_v48, %v4221_v48 }
0x130a   :  { %v2394_v10 = vpop.f32.mrf.mxu1 }
0x130b   :  { %v4227_v46 = vadd.f32 %v2394_v10, %v3993_v47  ;;  %v2424_v49 = vsel %vm120_vm0, %v2410_v38, 0.0  ;;  %v3270_v47 = vld [vmem:[%s4303_s8 + $0x30] sm:$0xff]  }
0x130c   :  { %2425 = vadd.xlane.f32.xlu0 %v2424_v49  ;;  %v3170_v50 = vpop.f32.mrf.mxu1  ;;  %3190 = vmatpush3.bf16.msra.mxu1 %v3270_v47 }
0x130d   :  { %v2411_v51 = vmul.f32 %v4227_v46, %v4227_v46  ;;  %3191 = vmatprep.subr.bf16.mxu1 %v3530_v19 }
0x130f   :  { %v2427_v44 = vsel %vm120_vm0, %v2411_v51, 0.0 }
0x1310   :  { %2428 = vadd.xlane.f32.xlu1 %v2427_v44  ;;  %3192 = vmatpush3.bf16.msra.mxu1 %v3271_v36 }
0x1311   :  { %3193 = vmatprep.subr.bf16.mxu1 %v3530_v19 }
0x1314   :  { %3194 = vmatpush3.bf16.msra.mxu1 %v3272_v13 }
0x1368   :  { %v2414_v53 = vpop.xlane.xlu0 %2413 }
0x1369   :  { %v2430_v54 = vmul.f32 0.03125, %v2414_v53 }
0x136b   :  { %v2436_v57 = vadd.f32 1e-06, %v2430_v54 }
0x136c   :  { %v2417_v59 = vpop.xlane.xlu1 %2416 }
0x136d   :  { %3405 = vrsqrt.f32 %v2436_v57  ;;  %v2431_v60 = vmul.f32 0.03125, %v2417_v59 }
0x136f   :  { %v2437_v62 = vadd.f32 1e-06, %v2431_v60 }
0x1371   :  { %3407 = vrsqrt.f32 %v2437_v62 }
0x137a   :  { %v3406_v63 = vpop.eup %3405 }
0x137b   :  { %v2448_v1 = vmul.f32 %v3406_v63, %v4197_v4 }
0x137d   :  { %v2460_v7 = vmul.f32 %v2813_v3, %v2448_v1 }
0x137e   :  { %v3408_v2 = vpop.eup %3407 }
0x137f   :  { %v2449_v6 = vmul.f32 %v3408_v2, %v4202_v26 }
0x1381   :  { %v2461_v8 = vmul.f32 %v2813_v3, %v2449_v6 }
0x1383   :  { %v2466_v9 = vpack.c.bf16 %v2461_v8, %v2460_v7 }
0x1385   :  { %3176 = vmatmul.mubr.msk.bf16.vlgmr.msra.gmra.mxu0 %vm120_vm0, %v2466_v9 }
0x1386   :  { %3179 = vmatprep.mubr.msk.bf16.mxu0 %vm3531_vm1, %v3530_v19 }
0x138d   :  { %v2420_v12 = vpop.xlane.xlu0 %2419 }
0x138e   :  { %v2432_v14 = vmul.f32 0.03125, %v2420_v12 }
0x1390   :  { %v2438_v16 = vadd.f32 1e-06, %v2432_v14 }
0x1391   :  { %v2423_v18 = vpop.xlane.xlu0 %2422 }
0x1392   :  { %3409 = vrsqrt.f32 %v2438_v16  ;;  %v2433_v55 = vmul.f32 0.03125, %v2423_v18 }
0x1394   :  { %v2439_v20 = vadd.f32 1e-06, %v2433_v55 }
0x1395   :  { %v2426_v22 = vpop.xlane.xlu0 %2425 }
0x1396   :  { %3411 = vrsqrt.f32 %v2439_v20  ;;  %v2434_v23 = vmul.f32 0.03125, %v2426_v22 }
0x1398   :  { %v2440_v24 = vadd.f32 1e-06, %v2434_v23 }
0x1399   :  { %v2429_v56 = vpop.xlane.xlu1 %2428 }
0x139a   :  { %3413 = vrsqrt.f32 %v2440_v24  ;;  %v2435_v25 = vmul.f32 0.03125, %v2429_v56 }
0x139c   :  { %v2441_v27 = vadd.f32 1e-06, %v2435_v25 }
0x139e   :  { %3415 = vrsqrt.f32 %v2441_v27 }
0x139f   :  { %v3410_v52 = vpop.eup %3409 }
0x13a0   :  { %v2450_v41 = vmul.f32 %v3410_v52, %v4209_v34 }
0x13a2   :  { %v2462_v5 = vmul.f32 %v2813_v3, %v2450_v41 }
0x13a3   :  { %v3412_v30 = vpop.eup %3411 }
0x13a4   :  { %v2451_v58 = vmul.f32 %v3412_v30, %v4215_v39 }
0x13a6   :  { %v2463_v29 = vmul.f32 %v2813_v3, %v2451_v58 }
0x13a7   :  { %v3414_v31 = vpop.eup %3413 }
0x13a8   :  { %v2467_v21 = vpack.c.bf16 %v2463_v29, %v2462_v5  ;;  %v2452_v32 = vmul.f32 %v3414_v31, %v4221_v48 }
0x13aa   :  { %3180 = vmatmul.mubr.msk.bf16.gmra.mxu0 %vm120_vm0, %v2467_v21  ;;  %v2464_v28 = vmul.f32 %v2813_v3, %v2452_v32 }
0x13ab   :  { %v3416_v33 = vpop.eup %3415  ;;  %3183 = vmatprep.mubr.msk.bf16.mxu0 %vm3531_vm1, %v3530_v19 }
0x13ac   :  { %v2453_v61 = vmul.f32 %v3416_v33, %v4227_v46 }
0x13ae   :  { %v2465_v11 = vmul.f32 %v2813_v3, %v2453_v61 }
0x13b0   :  { %v2468_v37 = vpack.c.bf16 %v2465_v11, %v2464_v28 }
0x13b2   :  { %3184 = vmatmul.mubr.msk.bf16.gmra.mxu0 %vm120_vm0, %v2468_v37 }
0x1445   :  { %v2529_v17 = vpop.f32.mrf.mxu0 }
0x1446   :  { %v2552_v15 = vmax.f32 %v2529_v17, 0.0 }
0x1447   :  { %v3177_v0 = vpop.f32.mrf.mxu0 }
0x1449   :  { %v2532_v40 = vpop.f32.mrf.mxu0 }
0x144a   :  { %v2553_v35 = vmax.f32 %v2532_v40, 0.0 }
0x144b   :  { %v3178_v43 = vpop.f32.mrf.mxu0 }
0x144c   :  { %v2558_v45 = vpack.c.bf16 %v2553_v35, %v2552_v15 }
0x144e   :  { %3196 = vmatmul.mubr.msk.bf16.vlgmr.msra.gmra.mxu1 %vm1323_vm3, %v2558_v45 }
0x144f   :  { %3199 = vmatprep.mubr.msk.bf16.mxu1 %vm3531_vm1, %v3530_v19 }
0x146a   :  { %v2537_v38 = vpop.f32.mrf.mxu0 }
0x146b   :  { %v2554_v50 = vmax.f32 %v2537_v38, 0.0 }
0x146c   :  { %v3181_v10 = vpop.f32.mrf.mxu0 }
0x146e   :  { %v2540_v49 = vpop.f32.mrf.mxu0 }
0x146f   :  { %v2555_v51 = vmax.f32 %v2540_v49, 0.0 }
0x1470   :  { %v3182_v44 = vpop.f32.mrf.mxu0 }
0x1471   :  { %v2559_v42 = vpack.c.bf16 %v2555_v51, %v2554_v50 }
0x1472   :  { %v2545_v47 = vpop.f32.mrf.mxu0 }
0x1473   :  { %3200 = vmatmul.mubr.msk.bf16.gmra.mxu1 %vm1323_vm3, %v2559_v42  ;;  %v2556_v57 = vmax.f32 %v2545_v47, 0.0 }
0x1474   :  { %v3185_v53 = vpop.f32.mrf.mxu0  ;;  %3203 = vmatprep.mubr.msk.bf16.mxu1 %vm3531_vm1, %v3530_v19 }
0x1476   :  { %v2548_v54 = vpop.f32.mrf.mxu0 }
0x1477   :  { %v2557_v59 = vmax.f32 %v2548_v54, 0.0 }
0x1478   :  { %v3186_v60 = vpop.f32.mrf.mxu0 }
0x1479   :  { %v2560_v62 = vpack.c.bf16 %v2557_v59, %v2556_v57 }
0x147b   :  { %3204 = vmatmul.mubr.msk.bf16.gmra.mxu1 %vm1323_vm3, %v2560_v62 }
0x150e   :  { %v2637_v63 = vpop.f32.mrf.mxu1 }
0x150f   :  { %v2660_v1 = vadd.f32 %v2637_v63, %v4197_v4 }
0x1510   :  { %v3197_v2 = vpop.f32.mrf.mxu1 }
0x1511   :  { %v2667_v3 = vmul.f32 %v2660_v1, %v2660_v1 }
0x1512   :  { %v2640_v6 = vpop.f32.mrf.mxu1 }
0x1513   :  { %v2661_v7 = vadd.f32 %v2640_v6, %v4202_v26  ;;  %v2673_v8 = vsel %vm120_vm0, %v2667_v3, 0.0 }
0x1514   :  { %2674 = vadd.xlane.f32.xlu0 %v2673_v8  ;;  %v3198_v9 = vpop.f32.mrf.mxu1 }
0x1515   :  { %v2668_v19 = vmul.f32 %v2661_v7, %v2661_v7 }
0x1517   :  { %v2676_v12 = vsel %vm120_vm0, %v2668_v19, 0.0 }
0x1518   :  { %2677 = vadd.xlane.f32.xlu1 %v2676_v12 }
0x1533   :  { %v2645_v14 = vpop.f32.mrf.mxu1 }
0x1534   :  { %v2662_v16 = vadd.f32 %v2645_v14, %v4209_v34 }
0x1535   :  { %v3201_v18 = vpop.f32.mrf.mxu1 }
0x1536   :  { %v2669_v55 = vmul.f32 %v2662_v16, %v2662_v16 }
0x1537   :  { %v2648_v20 = vpop.f32.mrf.mxu1 }
0x1538   :  { %v2663_v4 = vadd.f32 %v2648_v20, %v4215_v39  ;;  %v2679_v22 = vsel %vm120_vm0, %v2669_v55, 0.0 }
0x1539   :  { %2680 = vadd.xlane.f32.xlu0 %v2679_v22  ;;  %v3202_v26 = vpop.f32.mrf.mxu1 }
0x153a   :  { %v2670_v23 = vmul.f32 %v2663_v4, %v2663_v4 }
0x153b   :  { %v2653_v24 = vpop.f32.mrf.mxu1 }
0x153c   :  { %v2664_v56 = vadd.f32 %v2653_v24, %v4221_v48  ;;  %v2682_v25 = vsel %vm120_vm0, %v2670_v23, 0.0 }
0x153d   :  { %2683 = vadd.xlane.f32.xlu1 %v2682_v25  ;;  %v3205_v27 = vpop.f32.mrf.mxu1 }
0x153e   :  { %v2671_v52 = vmul.f32 %v2664_v56, %v2664_v56 }
0x153f   :  { %v2656_v41 = vpop.f32.mrf.mxu1 }
0x1540   :  { %v2665_v34 = vadd.f32 %v2656_v41, %v4227_v46  ;;  %v2685_v30 = vsel %vm120_vm0, %v2671_v52, 0.0  ;;  %v2834_v46 = vld [vmem:[%s4304_s9] ss:$0 sm:$0xff]  ;;  %s3538_s9 = smov [#allocation8]  }
0x1541   :  { %2686 = vadd.xlane.f32.xlu0 %v2685_v30  ;;  %v3206_v39 = vpop.f32.mrf.mxu1  ;;  %s2738_s29 = sshll.u32 %s3538_s9, 4  ;;  %s2739_s29 = int_to_ptr.vmem [resolvable:$true] %s2738_s29 }
0x1542   :  { %v2672_v58 = vmul.f32 %v2665_v34, %v2665_v34  ;;  %s3499_s0 = scalar_lea.vmem %s2739_s29, 768  ;;  %p3504_p2 = scmp.lt.s32.totalorder %s2739_s29, %s2739_s29 }
0x1543   :  { %p3500_p1 = scmp.ne.s32.totalorder %s2739_s29, %s3499_s0  ;;  %p3505_p3 = scmp.lt.s32.totalorder %s3499_s0, %s3499_s0 }
0x1544   :  { %v2688_v5 = vsel %vm120_vm0, %v2672_v58, 0.0 }
0x1545   :  { %2689 = vadd.xlane.f32.xlu1 %v2688_v5  ;;  %p3506_p4 = por %p3505_p3, %p3504_p2 }
0x1547   :  { %p3507_p5 = pnand %p3506_p4, %p3500_p1 }
0x159d   :  { %v2675_v29 = vpop.xlane.xlu0 %2674 }
0x159e   :  { %v2691_v31 = vmul.f32 0.03125, %v2675_v29 }
0x15a0   :  { %v2697_v21 = vadd.f32 1e-06, %v2691_v31 }
0x15a1   :  { %v2678_v48 = vpop.xlane.xlu1 %2677 }
0x15a2   :  { %3417 = vrsqrt.f32 %v2697_v21  ;;  %v2692_v32 = vmul.f32 0.03125, %v2678_v48 }
0x15a4   :  { %v2698_v33 = vadd.f32 1e-06, %v2692_v32 }
0x15a6   :  { %3419 = vrsqrt.f32 %v2698_v33 }
0x15af   :  { %v3418_v61 = vpop.eup %3417 }
0x15b0   :  { %v2709_v28 = vmul.f32 %v3418_v61, %v2660_v1 }
0x15b2   :  { %v2721_v11 = vmul.f32 %v2834_v46, %v2709_v28 }
0x15b3   :  { %v3420_v37 = vpop.eup %3419 }
0x15b4   :  { %2727 = vst.msk [vmem:[#allocation8] sm:$0xff] %vm120_vm0, %v2721_v11  ;;  %v2710_v36 = vmul.f32 %v3420_v37, %v2661_v7 }
0x15b6   :  { %v2722_v13 = vmul.f32 %v2834_v46, %v2710_v36 }
0x15b8   :  { %2728 = vst.msk [vmem:[#allocation8 + $0x8] sm:$0xff] %vm120_vm0, %v2722_v13 }
0x15c2   :  { %v2681_v17 = vpop.xlane.xlu0 %2680 }
0x15c3   :  { %v2693_v0 = vmul.f32 0.03125, %v2681_v17 }
0x15c5   :  { %v2699_v40 = vadd.f32 1e-06, %v2693_v0 }
0x15c6   :  { %v2684_v15 = vpop.xlane.xlu1 %2683 }
0x15c7   :  { %3421 = vrsqrt.f32 %v2699_v40  ;;  %v2694_v35 = vmul.f32 0.03125, %v2684_v15 }
0x15c9   :  { %v2700_v43 = vadd.f32 1e-06, %v2694_v35 }
0x15ca   :  { %v2687_v45 = vpop.xlane.xlu0 %2686 }
0x15cb   :  { %3423 = vrsqrt.f32 %v2700_v43  ;;  %v2695_v38 = vmul.f32 0.03125, %v2687_v45 }
0x15cd   :  { %v2701_v10 = vadd.f32 1e-06, %v2695_v38 }
0x15ce   :  { %v2690_v49 = vpop.xlane.xlu1 %2689 }
0x15cf   :  { %3425 = vrsqrt.f32 %v2701_v10  ;;  %v2696_v50 = vmul.f32 0.03125, %v2690_v49 }
0x15d1   :  { %v2702_v51 = vadd.f32 1e-06, %v2696_v50 }
0x15d3   :  { %3427 = vrsqrt.f32 %v2702_v51 }
0x15d4   :  { %v3422_v44 = vpop.eup %3421 }
0x15d5   :  { %v2711_v42 = vmul.f32 %v3422_v44, %v2662_v16 }
0x15d7   :  { %v2723_v47 = vmul.f32 %v2834_v46, %v2711_v42 }
0x15d8   :  { %v3424_v53 = vpop.eup %3423 }
0x15d9   :  { %2729 = vst.msk [vmem:[#allocation8 + $0x10] sm:$0xff] %vm120_vm0, %v2723_v47  ;;  %v2712_v54 = vmul.f32 %v3424_v53, %v2663_v4 }
0x15db   :  { %v2724_v57 = vmul.f32 %v2834_v46, %v2712_v54 }
0x15dc   :  { %v3426_v59 = vpop.eup %3425 }
0x15dd   :  { %2730 = vst.msk [vmem:[#allocation8 + $0x18] sm:$0xff] %vm120_vm0, %v2724_v57  ;;  %v2713_v60 = vmul.f32 %v3426_v59, %v2664_v56 }
0x15df   :  { %v2725_v62 = vmul.f32 %v2834_v46, %v2713_v60 }
0x15e0   :  { %v3428_v63 = vpop.eup %3427 }
0x15e1   :  { %2731 = vst.msk [vmem:[#allocation8 + $0x20] sm:$0xff] %vm120_vm0, %v2725_v62  ;;  %v2714_v1 = vmul.f32 %v3428_v63, %v2665_v34 }
0x15e3   :  { %v2726_v2 = vmul.f32 %v2834_v46, %v2714_v1 }
0x15e5   :  { %2732 = vst.msk [vmem:[#allocation8 + $0x28] sm:$0xff] %vm120_vm0, %v2726_v2 }
0x15e6   :  { %3510 = shalt.err (!%p3507_p5)
}
0x15e7   :  { %s3539_s30 = smov 128   ;;  %s3540_s11 = smov 8  }
0x15e8   :  { %2744 = dma.vmem_to_hbm [thread:$0]  %s2739_s29, 768, %s4305_s10, [#allocation4], %s3539_s30, %s3539_s30, %s3540_s11  }
0x15e9   :  { %3523 = dma.done.wait [#allocation4], 768  }
0x15ea   :  { %3524 = vsyncadd [#allocation4], 4294966528 }
0x15eb   :  { %2748 = vsyncpa [#allocation3], 1 }
0x15ec   :  { %2749 = vsyncpa [#allocation6], 1 }
0x15ed   :  { %2750 = vsyncpa [#allocation4], 1 }

</bundles_post_ra>
